<compile_context>
chip_gen: v6e
topology: v6e:2x2x1
jax: 0.10.0
libtpu: 0.0.40
codegen_flags: <defaults>
</compile_context>

<pallas_src>
import functools

import jax
import jax.numpy as jnp
import numpy as np
from jax import lax
from jax.experimental import pallas as pl
from jax.experimental.pallas import tpu as pltpu

EPS = 1e-5
HIGHEST = jax.lax.Precision.HIGHEST


def _pool_block_kernel(
    xcat_ref,                     # (B_pad, K_pad)   f32 or bf16
    wp_ref, bp_ref,               # (K_pad, 512), (1, 512)  -- folded Linear 1
    g1_ref, bt1_ref,              # (1, 512)  BN1 affine
    w2_ref, b2_ref,               # (512, 1024), (1, 1024)
    g2_ref, bt2_ref,              # (1, 1024) BN2 affine
    sc_ref, ec_ref,               # (S_pad, 1) int32  segment [start, end)
    sr_ref, er_ref,               # (1, S_pad) int32  segment [start, end)
    cinv_ref,                     # (S_pad, 1) f32    1 / max(count, 1)
    out_ref,                      # (B_pad, 1024) f32
):
    f32 = jnp.float32
    bsz = out_ref.shape[0]
    nseg = sc_ref.shape[0]

    # One-hot segment masks, built once and shared by both BN layers.
    #   m [s, b] = 1  iff  start[s] <= b < end[s]    (gather :  (S, B))
    #   mt[b, s] = m[s, b]                           (scatter:  (B, S))
    col = lax.broadcasted_iota(jnp.int32, (nseg, bsz), 1)
    m = jnp.where((col >= sc_ref[...]) & (col < ec_ref[...]), 1.0, 0.0)
    row = lax.broadcasted_iota(jnp.int32, (bsz, nseg), 0)
    mt = jnp.where((row >= sr_ref[...]) & (row < er_ref[...]), 1.0, 0.0)
    cinv = cinv_ref[...]

    def bn_relu(a, gamma, beta):
        # Training-mode BatchNorm1d per segment; stats + row scatter on the
        # MXU.  Centered two-pass variance (no E[x^2] - mean^2 cancellation).
        mean = jnp.dot(m, a, preferred_element_type=f32) * cinv        # (S, N)
        mean_rows = jnp.dot(mt, mean, preferred_element_type=f32)      # (B, N)
        c = a - mean_rows
        var = jnp.dot(m, c * c, preferred_element_type=f32) * cinv     # (S, N)
        scale = lax.rsqrt(var + EPS) * gamma                           # (S, N)
        shift = beta - mean * scale                                    # (S, N)
        scale_rows = jnp.dot(mt, scale, preferred_element_type=f32)    # (B, N)
        shift_rows = jnp.dot(mt, shift, preferred_element_type=f32)    # (B, N)
        # Rows not covered by any segment get scale = shift = 0 -> exact 0.
        return jnp.maximum(a * scale_rows + shift_rows, 0.0)

    # ---- Layer 1 (spatial embedding folded in): one MXU pass, full batch ---
    a1 = jnp.dot(xcat_ref[...], wp_ref[...],
                 preferred_element_type=f32) + bp_ref[...]
    h1 = bn_relu(a1, g1_ref[...], bt1_ref[...])

    # ---- Layer 2: one MXU pass, full batch ---------------------------------
    a2 = jnp.dot(h1.astype(w2_ref.dtype), w2_ref[...],
                 preferred_element_type=f32) + b2_ref[...]

    # single, unmasked, lane-dense (multiple of 128) store
    out_ref[...] = bn_relu(a2, g2_ref[...], bt2_ref[...])


def _round_up(x, n):
    return ((x + n - 1) // n) * n


def init_params(key, embedding_dim=64, h_dim=64, bottleneck_dim=1024,
                block_flag_num=2):
    """Deterministic synthetic parameters (shapes match the torch module)."""
    d_in = block_flag_num * 2            # 4
    d_emb = block_flag_num * 16          # 32
    d_pre = d_emb + h_dim                # 96
    d_mid = 512
    ks = jax.random.split(key, 6)
    f32 = jnp.float32
    w1 = jax.random.normal(ks[1], (d_pre, d_mid), f32) * 0.05
    params = dict(
        wse=jax.random.normal(ks[0], (d_in, d_emb), f32) * 0.3,
        bse=jax.random.normal(ks[2], (1, d_emb), f32) * 0.1,
        w1e=w1[:d_emb],                      # rows multiplying the embedding
        w1h=w1[d_emb:],                      # rows multiplying the hidden
        b1=jax.random.normal(ks[3], (1, d_mid), f32) * 0.1,
        g1=jnp.ones((1, d_mid), f32),
        bt1=jnp.zeros((1, d_mid), f32),
        w2=jax.random.normal(ks[4], (d_mid, bottleneck_dim), f32) * 0.05,
        b2=jax.random.normal(ks[5], (1, bottleneck_dim), f32) * 0.1,
        g2=jnp.ones((1, bottleneck_dim), f32),
        bt2=jnp.zeros((1, bottleneck_dim), f32),
    )
    return params


@functools.partial(jax.jit, static_argnames=("use_bf16",))
def pool_block_net_forward(params, h_state, seq_start_end, end_block_pos_rel,
                           use_bf16=False):
    batch = end_block_pos_rel.shape[0]
    h_dim = params["w1h"].shape[0]
    bottleneck_dim = params["w2"].shape[1]
    num_seq = seq_start_end.shape[0]

    # glue: permute(0,2,1).reshape(n,-1), h_state.view(-1, h_dim), concat
    x_rel = jnp.transpose(end_block_pos_rel, (0, 2, 1)).reshape(batch, -1)
    h = h_state.reshape(-1, h_dim).astype(jnp.float32)
    x_cat = jnp.concatenate([x_rel.astype(jnp.float32), h], axis=1)

    # fold spatial-embedding Linear into the first mlp Linear (wrapper side)
    wp = jnp.concatenate(
        [jnp.dot(params["wse"], params["w1e"], precision=HIGHEST),
         params["w1h"]], axis=0)
    bp = (jnp.dot(params["bse"], params["w1e"], precision=HIGHEST)
          + params["b1"])

    # padding: K -> multiple of 128, batch -> multiple of 8, segments -> 8
    d_pre = wp.shape[0]
    k_pad = _round_up(max(d_pre, 128), 128)
    b_pad = _round_up(max(batch, 8), 8)
    s_pad = _round_up(max(num_seq, 8), 8)

    x_cat = jnp.pad(x_cat, ((0, b_pad - batch), (0, k_pad - d_pre)))
    wp = jnp.pad(wp, ((0, k_pad - d_pre), (0, 0)))

    # bf16 matmul operands (native MXU on v6e/v7x); BN math stays f32.
    mm_dtype = jnp.bfloat16 if use_bf16 else jnp.float32
    x_cat = x_cat.astype(mm_dtype)
    wp = wp.astype(mm_dtype)
    w2 = params["w2"].astype(mm_dtype)

    # segment table (padded segments are empty: start = end = 0)
    starts = jnp.pad(seq_start_end[:, 0].astype(jnp.int32),
                     (0, s_pad - num_seq))
    ends = jnp.pad(seq_start_end[:, 1].astype(jnp.int32),
                   (0, s_pad - num_seq))
    sc = starts.reshape(s_pad, 1)
    ec = ends.reshape(s_pad, 1)
    sr = starts.reshape(1, s_pad)
    er = ends.reshape(1, s_pad)
    cinv = (1.0 / jnp.maximum((ends - starts).astype(jnp.float32), 1.0)
            ).reshape(s_pad, 1)

    operands = (x_cat, wp, bp.astype(jnp.float32),
                params["g1"], params["bt1"],
                w2, params["b2"], params["g2"], params["bt2"],
                sc, ec, sr, er, cinv)

    # grid=() -> single invocation, whole operands resident in VMEM,
    # no pipeline bookkeeping and no double-buffering of the weights.
    out = pl.pallas_call(
        _pool_block_kernel,
        out_shape=jax.ShapeDtypeStruct((b_pad, bottleneck_dim), jnp.float32),
        in_specs=[pl.BlockSpec(memory_space=pltpu.MemorySpace.VMEM)
                  for _ in operands],
        out_specs=pl.BlockSpec(memory_space=pltpu.MemorySpace.VMEM),
    )(*operands)
    return out[:batch]


def reference_forward(params, h_state, seq_start_end, end_block_pos_rel):
    """Pure-JAX replica of the torch forward (training-mode BatchNorm)."""
    batch = end_block_pos_rel.shape[0]
    h_dim = params["w1h"].shape[0]
    x_rel = jnp.transpose(end_block_pos_rel, (0, 2, 1)).reshape(batch, -1)
    h = h_state.reshape(-1, h_dim)
    outs = []
    for start, end in np.asarray(seq_start_end).tolist():
        xr = x_rel[start:end]
        hh = h[start:end]
        emb = jnp.dot(xr, params["wse"], precision=HIGHEST) + params["bse"]
        a1 = (jnp.dot(emb, params["w1e"], precision=HIGHEST)
              + jnp.dot(hh, params["w1h"], precision=HIGHEST) + params["b1"])
        m1 = a1.mean(0, keepdims=True)
        v1 = ((a1 - m1) ** 2).mean(0, keepdims=True)
        h1 = jnp.maximum((a1 - m1) / jnp.sqrt(v1 + EPS) * params["g1"]
                         + params["bt1"], 0.0)
        a2 = jnp.dot(h1, params["w2"], precision=HIGHEST) + params["b2"]
        m2 = a2.mean(0, keepdims=True)
        v2 = ((a2 - m2) ** 2).mean(0, keepdims=True)
        o = jnp.maximum((a2 - m2) / jnp.sqrt(v2 + EPS) * params["g2"]
                        + params["bt2"], 0.0)
        outs.append(o)
    return jnp.concatenate(outs, axis=0)


if __name__ == "__main__":
    key = jax.random.PRNGKey(0)
    k_p, k_h, k_r = jax.random.split(key, 3)

    h_dim = 64
    block_flag_num = 2
    batch = 8                                    # total pedestrians

    params = init_params(k_p, h_dim=h_dim, block_flag_num=block_flag_num)

    # inputs: h_state (1, batch, h_dim), end_block_pos_rel (batch, 2, bfn)
    h_state = jax.random.normal(k_h, (1, batch, h_dim), jnp.float32)
    end_block_pos_rel = jax.random.normal(k_r, (batch, 2, block_flag_num),
                                          jnp.float32)
    seq_start_end = jnp.array([[0, 3], [3, 8]], dtype=jnp.int32)  # 2 scenes

    # f32 path: strict check against the pure-JAX reference.
    out = pool_block_net_forward(params, h_state, seq_start_end,
                                 end_block_pos_rel)
    out = jax.block_until_ready(out)
    ref = reference_forward(params, h_state, seq_start_end, end_block_pos_rel)
    np.testing.assert_allclose(np.asarray(out), np.asarray(ref),
                               rtol=1e-3, atol=1e-3)
    assert out.shape == (batch, 1024) and out.dtype == jnp.float32

    # bf16 matmul-operand path (native MXU on v6e/v7x): run + sanity check.
    out_bf16 = pool_block_net_forward(params, h_state, seq_start_end,
                                      end_block_pos_rel, use_bf16=True)
    out_bf16 = jax.block_until_ready(out_bf16)
    assert out_bf16.shape == (batch, 1024)
    assert bool(jnp.all(jnp.isfinite(out_bf16)))

    print("KERNEL_OK")
</pallas_src>

<mosaic_0001>
module attributes {stable_mosaic.version = 11 : i64} {
  func.func @_pool_block_kernel(%arg0: memref<8x128xf32, #tpu.memory_space<vmem>>, %arg1: memref<128x512xf32, #tpu.memory_space<vmem>>, %arg2: memref<1x512xf32, #tpu.memory_space<vmem>>, %arg3: memref<1x512xf32, #tpu.memory_space<vmem>>, %arg4: memref<1x512xf32, #tpu.memory_space<vmem>>, %arg5: memref<512x1024xf32, #tpu.memory_space<vmem>>, %arg6: memref<1x1024xf32, #tpu.memory_space<vmem>>, %arg7: memref<1x1024xf32, #tpu.memory_space<vmem>>, %arg8: memref<1x1024xf32, #tpu.memory_space<vmem>>, %arg9: memref<8x1xi32, #tpu.memory_space<vmem>>, %arg10: memref<8x1xi32, #tpu.memory_space<vmem>>, %arg11: memref<1x8xi32, #tpu.memory_space<vmem>>, %arg12: memref<1x8xi32, #tpu.memory_space<vmem>>, %arg13: memref<8x1xf32, #tpu.memory_space<vmem>>, %arg14: memref<8x1024xf32, #tpu.memory_space<vmem>>) attributes {dimension_semantics = [], scalar_prefetch = 0 : i64, scratch_operands = 0 : i64, tpu.core_type = #tpu.core_type<tc>} {
    %0 = tpu.iota {dimensions = array<i32: 1>} : vector<8x8xi32>
    %c0 = arith.constant 0 : index
    %c0_0 = arith.constant 0 : index
    %1 = vector.load %arg9[%c0, %c0_0] : memref<8x1xi32, #tpu.memory_space<vmem>>, vector<8x1xi32>
    %2 = vector.broadcast %1 : vector<8x1xi32> to vector<8x8xi32>
    %3 = arith.cmpi sge, %0, %2 : vector<8x8xi32>
    %c0_1 = arith.constant 0 : index
    %c0_2 = arith.constant 0 : index
    %4 = vector.load %arg10[%c0_1, %c0_2] : memref<8x1xi32, #tpu.memory_space<vmem>>, vector<8x1xi32>
    %5 = vector.broadcast %4 : vector<8x1xi32> to vector<8x8xi32>
    %6 = arith.cmpi slt, %0, %5 : vector<8x8xi32>
    %7 = arith.andi %3, %6 : vector<8x8xi1>
    %cst = arith.constant 1.000000e+00 : f32
    %cst_3 = arith.constant 0.000000e+00 : f32
    %8 = vector.broadcast %cst : f32 to vector<8x8xf32>
    %9 = vector.broadcast %cst_3 : f32 to vector<8x8xf32>
    %10 = arith.select %7, %8, %9 : vector<8x8xi1>, vector<8x8xf32>
    %11 = tpu.iota {dimensions = array<i32: 0>} : vector<8x8xi32>
    %c0_4 = arith.constant 0 : index
    %c0_5 = arith.constant 0 : index
    %12 = vector.load %arg11[%c0_4, %c0_5] : memref<1x8xi32, #tpu.memory_space<vmem>>, vector<1x8xi32>
    %13 = vector.broadcast %12 : vector<1x8xi32> to vector<8x8xi32>
    %14 = arith.cmpi sge, %11, %13 : vector<8x8xi32>
    %c0_6 = arith.constant 0 : index
    %c0_7 = arith.constant 0 : index
    %15 = vector.load %arg12[%c0_6, %c0_7] : memref<1x8xi32, #tpu.memory_space<vmem>>, vector<1x8xi32>
    %16 = vector.broadcast %15 : vector<1x8xi32> to vector<8x8xi32>
    %17 = arith.cmpi slt, %11, %16 : vector<8x8xi32>
    %18 = arith.andi %14, %17 : vector<8x8xi1>
    %cst_8 = arith.constant 1.000000e+00 : f32
    %cst_9 = arith.constant 0.000000e+00 : f32
    %19 = vector.broadcast %cst_8 : f32 to vector<8x8xf32>
    %20 = vector.broadcast %cst_9 : f32 to vector<8x8xf32>
    %21 = arith.select %18, %19, %20 : vector<8x8xi1>, vector<8x8xf32>
    %c0_10 = arith.constant 0 : index
    %c0_11 = arith.constant 0 : index
    %22 = vector.load %arg13[%c0_10, %c0_11] : memref<8x1xf32, #tpu.memory_space<vmem>>, vector<8x1xf32>
    %c0_12 = arith.constant 0 : index
    %c0_13 = arith.constant 0 : index
    %23 = vector.load %arg0[%c0_12, %c0_13] : memref<8x128xf32, #tpu.memory_space<vmem>>, vector<8x128xf32>
    %c0_14 = arith.constant 0 : index
    %c0_15 = arith.constant 0 : index
    %24 = vector.load %arg1[%c0_14, %c0_15] : memref<128x512xf32, #tpu.memory_space<vmem>>, vector<128x512xf32>
    %cst_16 = arith.constant dense<0.000000e+00> : vector<8x512xf32>
    %25 = tpu.matmul %23, %24, %cst_16 {dimension_numbers = #tpu.dot_dimension_numbers<[1], [0], [0], [1], [0, 0, 1, 1], [], []>} : vector<8x128xf32>, vector<128x512xf32>, vector<8x512xf32> -> vector<8x512xf32>
    %c0_17 = arith.constant 0 : index
    %c0_18 = arith.constant 0 : index
    %26 = vector.load %arg2[%c0_17, %c0_18] : memref<1x512xf32, #tpu.memory_space<vmem>>, vector<1x512xf32>
    %27 = vector.broadcast %26 : vector<1x512xf32> to vector<8x512xf32>
    %28 = arith.addf %25, %27 : vector<8x512xf32>
    %c0_19 = arith.constant 0 : index
    %c0_20 = arith.constant 0 : index
    %29 = vector.load %arg3[%c0_19, %c0_20] : memref<1x512xf32, #tpu.memory_space<vmem>>, vector<1x512xf32>
    %c0_21 = arith.constant 0 : index
    %c0_22 = arith.constant 0 : index
    %30 = vector.load %arg4[%c0_21, %c0_22] : memref<1x512xf32, #tpu.memory_space<vmem>>, vector<1x512xf32>
    %cst_23 = arith.constant dense<0.000000e+00> : vector<8x512xf32>
    %31 = tpu.matmul %10, %28, %cst_23 {dimension_numbers = #tpu.dot_dimension_numbers<[1], [0], [0], [1], [0, 0, 1, 1], [], []>} : vector<8x8xf32>, vector<8x512xf32>, vector<8x512xf32> -> vector<8x512xf32>
    %32 = vector.broadcast %22 : vector<8x1xf32> to vector<8x512xf32>
    %33 = arith.mulf %31, %32 : vector<8x512xf32>
    %cst_24 = arith.constant dense<0.000000e+00> : vector<8x512xf32>
    %34 = tpu.matmul %21, %33, %cst_24 {dimension_numbers = #tpu.dot_dimension_numbers<[1], [0], [0], [1], [0, 0, 1, 1], [], []>} : vector<8x8xf32>, vector<8x512xf32>, vector<8x512xf32> -> vector<8x512xf32>
    %35 = arith.subf %28, %34 : vector<8x512xf32>
    %36 = arith.mulf %35, %35 : vector<8x512xf32>
    %cst_25 = arith.constant dense<0.000000e+00> : vector<8x512xf32>
    %37 = tpu.matmul %10, %36, %cst_25 {dimension_numbers = #tpu.dot_dimension_numbers<[1], [0], [0], [1], [0, 0, 1, 1], [], []>} : vector<8x8xf32>, vector<8x512xf32>, vector<8x512xf32> -> vector<8x512xf32>
    %38 = vector.broadcast %22 : vector<8x1xf32> to vector<8x512xf32>
    %39 = arith.mulf %37, %38 : vector<8x512xf32>
    %cst_26 = arith.constant 9.99999974E-6 : f32
    %40 = vector.broadcast %cst_26 : f32 to vector<8x512xf32>
    %41 = arith.addf %39, %40 : vector<8x512xf32>
    %42 = math.rsqrt %41 : vector<8x512xf32>
    %43 = vector.broadcast %29 : vector<1x512xf32> to vector<8x512xf32>
    %44 = arith.mulf %42, %43 : vector<8x512xf32>
    %45 = arith.mulf %33, %44 : vector<8x512xf32>
    %46 = vector.broadcast %30 : vector<1x512xf32> to vector<8x512xf32>
    %47 = arith.subf %46, %45 : vector<8x512xf32>
    %cst_27 = arith.constant dense<0.000000e+00> : vector<8x512xf32>
    %48 = tpu.matmul %21, %44, %cst_27 {dimension_numbers = #tpu.dot_dimension_numbers<[1], [0], [0], [1], [0, 0, 1, 1], [], []>} : vector<8x8xf32>, vector<8x512xf32>, vector<8x512xf32> -> vector<8x512xf32>
    %cst_28 = arith.constant dense<0.000000e+00> : vector<8x512xf32>
    %49 = tpu.matmul %21, %47, %cst_28 {dimension_numbers = #tpu.dot_dimension_numbers<[1], [0], [0], [1], [0, 0, 1, 1], [], []>} : vector<8x8xf32>, vector<8x512xf32>, vector<8x512xf32> -> vector<8x512xf32>
    %50 = arith.mulf %28, %48 : vector<8x512xf32>
    %51 = arith.addf %50, %49 : vector<8x512xf32>
    %cst_29 = arith.constant 0.000000e+00 : f32
    %52 = vector.broadcast %cst_29 : f32 to vector<8x512xf32>
    %53 = arith.maximumf %51, %52 : vector<8x512xf32>
    %c0_30 = arith.constant 0 : index
    %c0_31 = arith.constant 0 : index
    %54 = vector.load %arg5[%c0_30, %c0_31] : memref<512x1024xf32, #tpu.memory_space<vmem>>, vector<512x1024xf32>
    %cst_32 = arith.constant dense<0.000000e+00> : vector<8x1024xf32>
    %55 = tpu.matmul %53, %54, %cst_32 {dimension_numbers = #tpu.dot_dimension_numbers<[1], [0], [0], [1], [0, 0, 1, 1], [], []>} : vector<8x512xf32>, vector<512x1024xf32>, vector<8x1024xf32> -> vector<8x1024xf32>
    %c0_33 = arith.constant 0 : index
    %c0_34 = arith.constant 0 : index
    %56 = vector.load %arg6[%c0_33, %c0_34] : memref<1x1024xf32, #tpu.memory_space<vmem>>, vector<1x1024xf32>
    %57 = vector.broadcast %56 : vector<1x1024xf32> to vector<8x1024xf32>
    %58 = arith.addf %55, %57 : vector<8x1024xf32>
    %c0_35 = arith.constant 0 : index
    %c0_36 = arith.constant 0 : index
    %59 = vector.load %arg7[%c0_35, %c0_36] : memref<1x1024xf32, #tpu.memory_space<vmem>>, vector<1x1024xf32>
    %c0_37 = arith.constant 0 : index
    %c0_38 = arith.constant 0 : index
    %60 = vector.load %arg8[%c0_37, %c0_38] : memref<1x1024xf32, #tpu.memory_space<vmem>>, vector<1x1024xf32>
    %cst_39 = arith.constant dense<0.000000e+00> : vector<8x1024xf32>
    %61 = tpu.matmul %10, %58, %cst_39 {dimension_numbers = #tpu.dot_dimension_numbers<[1], [0], [0], [1], [0, 0, 1, 1], [], []>} : vector<8x8xf32>, vector<8x1024xf32>, vector<8x1024xf32> -> vector<8x1024xf32>
    %62 = vector.broadcast %22 : vector<8x1xf32> to vector<8x1024xf32>
    %63 = arith.mulf %61, %62 : vector<8x1024xf32>
    %cst_40 = arith.constant dense<0.000000e+00> : vector<8x1024xf32>
    %64 = tpu.matmul %21, %63, %cst_40 {dimension_numbers = #tpu.dot_dimension_numbers<[1], [0], [0], [1], [0, 0, 1, 1], [], []>} : vector<8x8xf32>, vector<8x1024xf32>, vector<8x1024xf32> -> vector<8x1024xf32>
    %65 = arith.subf %58, %64 : vector<8x1024xf32>
    %66 = arith.mulf %65, %65 : vector<8x1024xf32>
    %cst_41 = arith.constant dense<0.000000e+00> : vector<8x1024xf32>
    %67 = tpu.matmul %10, %66, %cst_41 {dimension_numbers = #tpu.dot_dimension_numbers<[1], [0], [0], [1], [0, 0, 1, 1], [], []>} : vector<8x8xf32>, vector<8x1024xf32>, vector<8x1024xf32> -> vector<8x1024xf32>
    %68 = vector.broadcast %22 : vector<8x1xf32> to vector<8x1024xf32>
    %69 = arith.mulf %67, %68 : vector<8x1024xf32>
    %cst_42 = arith.constant 9.99999974E-6 : f32
    %70 = vector.broadcast %cst_42 : f32 to vector<8x1024xf32>
    %71 = arith.addf %69, %70 : vector<8x1024xf32>
    %72 = math.rsqrt %71 : vector<8x1024xf32>
    %73 = vector.broadcast %59 : vector<1x1024xf32> to vector<8x1024xf32>
    %74 = arith.mulf %72, %73 : vector<8x1024xf32>
    %75 = arith.mulf %63, %74 : vector<8x1024xf32>
    %76 = vector.broadcast %60 : vector<1x1024xf32> to vector<8x1024xf32>
    %77 = arith.subf %76, %75 : vector<8x1024xf32>
    %cst_43 = arith.constant dense<0.000000e+00> : vector<8x1024xf32>
    %78 = tpu.matmul %21, %74, %cst_43 {dimension_numbers = #tpu.dot_dimension_numbers<[1], [0], [0], [1], [0, 0, 1, 1], [], []>} : vector<8x8xf32>, vector<8x1024xf32>, vector<8x1024xf32> -> vector<8x1024xf32>
    %cst_44 = arith.constant dense<0.000000e+00> : vector<8x1024xf32>
    %79 = tpu.matmul %21, %77, %cst_44 {dimension_numbers = #tpu.dot_dimension_numbers<[1], [0], [0], [1], [0, 0, 1, 1], [], []>} : vector<8x8xf32>, vector<8x1024xf32>, vector<8x1024xf32> -> vector<8x1024xf32>
    %80 = arith.mulf %58, %78 : vector<8x1024xf32>
    %81 = arith.addf %80, %79 : vector<8x1024xf32>
    %cst_45 = arith.constant 0.000000e+00 : f32
    %82 = vector.broadcast %cst_45 : f32 to vector<8x1024xf32>
    %83 = arith.maximumf %81, %82 : vector<8x1024xf32>
    %c0_46 = arith.constant 0 : index
    %c0_47 = arith.constant 0 : index
    %84 = vector.load %arg14[%c0_46, %c0_47] : memref<8x1024xf32, #tpu.memory_space<vmem>>, vector<8x1024xf32>
    tpu.vector_store %arg14[%c0_46, %c0_47], %83 {strides = array<i32>} : memref<8x1024xf32, #tpu.memory_space<vmem>>, vector<8x1024xf32>,
    return
  }
}

</mosaic_0001>

<bundles_post_ra>
// kernel: pool_block_net_forward.1
= control target key start
LH: loop header
LB: loop body
LE: loop exit
PB: predicated region body
PF: predicated region fallthrough
CT: control target
= control target key end

     0   :  { %19 = vsyncpa [#allocation3], 0  ;;  %s4817_s0 = inlined_call_operand.vmem [shape: f32[8,128], index: 0, kind: input, shape index: {}]   ;;  %s4818_s1 = inlined_call_operand.vmem [shape: f32[128,512], index: 1, kind: input, shape index: {}]   ;;  %s4819_s2 = inlined_call_operand.vmem [shape: f32[1,512], index: 2, kind: input, shape index: {}]   ;;  %s4820_s3 = inlined_call_operand.hbm [shape: f32[1,512], index: 3, kind: input, shape index: {}]   ;;  %s4821_s4 = inlined_call_operand.hbm [shape: f32[1,512], index: 4, kind: input, shape index: {}]   ;;  %s4822_s5 = inlined_call_operand.hbm [shape: f32[512,1024], index: 5, kind: input, shape index: {}]   ;;  %s4823_s6 = inlined_call_operand.hbm [shape: f32[1,1024], index: 6, kind: input, shape index: {}]   ;;  %s4824_s7 = inlined_call_operand.hbm [shape: f32[1,1024], index: 7, kind: input, shape index: {}]   ;;  %s4825_s8 = inlined_call_operand.hbm [shape: f32[1,1024], index: 8, kind: input, shape index: {}]   ;;  %s4826_s9 = inlined_call_operand.vmem [shape: s32[8,1], index: 9, kind: input, shape index: {}]   ;;  %s4827_s10 = inlined_call_operand.vmem [shape: s32[8,1], index: 10, kind: input, shape index: {}]   ;;  %s4828_s11 = inlined_call_operand.vmem [shape: s32[1,8], index: 11, kind: input, shape index: {}]   ;;  %s4829_s12 = inlined_call_operand.vmem [shape: s32[1,8], index: 12, kind: input, shape index: {}]   ;;  %s4830_s13 = inlined_call_operand.vmem [shape: f32[8,1], index: 13, kind: input, shape index: {}]   ;;  %s4831_s14 = inlined_call_operand.hbm [shape: f32[8,1024], index: 14, kind: output, shape index: {}]  }
   0x1   :  { %20 = vsyncpa [#allocation6], 0 }
   0x2   :  { %21 = vsyncpa [#allocation9], 0 }
   0x3   :  { %22 = vsyncpa [#allocation12], 0 }
   0x4   :  { %23 = vsyncpa [#allocation4], 0  ;;  %s4161_s29 = smov [#allocation5]   ;;  %s4162_s15 = smov [#allocation8]  }
   0x5   :  { %s46_s30 = sshll.u32 %s4161_s29, 4  ;;  %s68_s16 = sshll.u32 %s4162_s15, 4  ;;  %s47_s30 = int_to_ptr.vmem [resolvable:$true] %s46_s30  ;;  %s69_s16 = int_to_ptr.vmem [resolvable:$true] %s68_s16 }
   0x6   :  { %s4019_s17 = scalar_lea.vmem %s47_s30, 64  ;;  %p4024_p1 = scmp.lt.s32.totalorder %s47_s30, %s47_s30 }
   0x7   :  { %p4020_p0 = scmp.ne.s32.totalorder %s47_s30, %s4019_s17  ;;  %p4025_p2 = scmp.lt.s32.totalorder %s4019_s17, %s4019_s17 }
   0x9   :  { %p4026_p3 = por %p4025_p2, %p4024_p1 }
   0xb   :  { %p4027_p4 = pnand %p4026_p3, %p4020_p0 }
   0xd   :  { %4030 = shalt.err (!%p4027_p4)
}
   0xe   :  { %49 = dma.hbm_to_vmem [thread:$0]  %s4821_s4, 64, %s47_s30, [#allocation6]  }
   0xf   :  { %s4039_s20 = scalar_lea.vmem %s69_s16, 128  ;;  %p4044_p6 = scmp.lt.s32.totalorder %s69_s16, %s69_s16 }
  0x10   :  { %p4040_p5 = scmp.ne.s32.totalorder %s69_s16, %s4039_s20  ;;  %p4045_p7 = scmp.lt.s32.totalorder %s4039_s20, %s4039_s20 }
  0x12   :  { %p4046_p8 = por %p4045_p7, %p4044_p6 }
  0x14   :  { %p4047_p9 = pnand %p4046_p8, %p4040_p5 }
  0x16   :  { %4050 = shalt.err (!%p4047_p9)
}
  0x17   :  { %71 = dma.hbm_to_vmem [thread:$0]  %s4823_s6, 128, %s69_s16, [#allocation9]  }
  0x18   :  { %s4163_s23 = smov [#allocation2]   ;;  %s4164_s25 = smov [#allocation7]  }
  0x19   :  { %s36_s24 = sshll.u32 %s4163_s23, 4  ;;  %s55_s26 = sshll.u32 %s4164_s25, 4  ;;  %s37_s24 = int_to_ptr.vmem [resolvable:$true] %s36_s24  ;;  %s56_s26 = int_to_ptr.vmem [resolvable:$true] %s55_s26 }
  0x1a   :  { %s4059_s27 = scalar_lea.vmem %s37_s24, 64  ;;  %p4064_p11 = scmp.lt.s32.totalorder %s37_s24, %s37_s24 }
  0x1b   :  { %p4060_p10 = scmp.ne.s32.totalorder %s37_s24, %s4059_s27  ;;  %p4065_p12 = scmp.lt.s32.totalorder %s4059_s27, %s4059_s27 }
  0x1d   :  { %p4066_p13 = por %p4065_p12, %p4064_p11 }
  0x1f   :  { %p4067_p0 = pnand %p4066_p13, %p4060_p10 }
  0x21   :  { %4070 = shalt.err (!%p4067_p0)
}
  0x22   :  { %39 = dma.hbm_to_vmem [thread:$0]  %s4820_s3, 64, %s37_s24, [#allocation3]  }
  0x23   :  { %s4079_s29 = scalar_lea.vmem %s56_s26, 65536  ;;  %p4084_p2 = scmp.lt.s32.totalorder %s56_s26, %s56_s26 }
  0x24   :  { %p4080_p1 = scmp.ne.s32.totalorder %s56_s26, %s4079_s29  ;;  %p4085_p3 = scmp.lt.s32.totalorder %s4079_s29, %s4079_s29 }
  0x26   :  { %p4086_p4 = por %p4085_p3, %p4084_p2 }
  0x28   :  { %p4087_p5 = pnand %p4086_p4, %p4080_p1 }
  0x2a   :  { %4090 = shalt.err (!%p4087_p5)
}
  0x2b   :  { %s4165_s6 = smov 1024   ;;  %s4166_s30 = smov 64  }
  0x2c   :  { %61 = dma.hbm_to_vmem [thread:$0]  %s4822_s5, 65536, %s56_s26, [#allocation6], %s4165_s6, %s4165_s6, %s4166_s30  }
  0x2d   :  { %s4167_s17 = smov [#allocation10]   ;;  %s4168_s19 = smov [#allocation11]  }
  0x2e   :  { %s78_s18 = sshll.u32 %s4167_s17, 4  ;;  %s88_s20 = sshll.u32 %s4168_s19, 4  ;;  %s79_s18 = int_to_ptr.vmem [resolvable:$true] %s78_s18  ;;  %s89_s20 = int_to_ptr.vmem [resolvable:$true] %s88_s20 }
  0x2f   :  { %s4099_s3 = scalar_lea.vmem %s79_s18, 128  ;;  %p4104_p7 = scmp.lt.s32.totalorder %s79_s18, %s79_s18 }
  0x30   :  { %p4100_p6 = scmp.ne.s32.totalorder %s79_s18, %s4099_s3  ;;  %p4105_p8 = scmp.lt.s32.totalorder %s4099_s3, %s4099_s3 }
  0x32   :  { %p4106_p9 = por %p4105_p8, %p4104_p7 }
  0x34   :  { %p4107_p10 = pnand %p4106_p9, %p4100_p6 }
  0x36   :  { %4110 = shalt.err (!%p4107_p10)
}
  0x37   :  { %81 = dma.hbm_to_vmem [thread:$0]  %s4824_s7, 128, %s79_s18, [#allocation9]  }
  0x38   :  { %s4119_s23 = scalar_lea.vmem %s89_s20, 128  ;;  %p4124_p12 = scmp.lt.s32.totalorder %s89_s20, %s89_s20 }
  0x39   :  { %p4120_p11 = scmp.ne.s32.totalorder %s89_s20, %s4119_s23  ;;  %p4125_p13 = scmp.lt.s32.totalorder %s4119_s23, %s4119_s23 }
  0x3b   :  { %p4126_p0 = por %p4125_p13, %p4124_p12 }
  0x3d   :  { %p4127_p1 = pnand %p4126_p0, %p4120_p11 }
  0x3f   :  { %4130 = shalt.err (!%p4127_p1)
}
  0x40   :  { %91 = dma.hbm_to_vmem [thread:$0]  %s4825_s8, 128, %s89_s20, [#allocation12]  }
  0x41   :  { %4151 = dma.done.wait [#allocation3], 64  }
  0x42   :  { %4152 = vsyncadd [#allocation3], 4294967232 }
  0x43   :  { %4153 = dma.done.wait [#allocation6], 65600  }
  0x44   :  { %4154 = vsyncadd [#allocation6], 4294901696 }
  0x45   :  { %4155 = dma.done.wait [#allocation9], 256  }
  0x46   :  { %4156 = vsyncadd [#allocation9], 4294967040 }
  0x47   :  { %4157 = dma.done.wait [#allocation12], 128  }
  0x48   :  { %4158 = vsyncadd [#allocation12], 4294967168  ;;  %v4169_v0 = vmov 0.0   ;;  %v4170_v1 = vmov 0   ;;  %v213_v2 = vld [vmem:[%s4818_s1 + $0x1e8] sm:$0xff]  ;;  %v215_v3 = vld [vmem:[%s4818_s1 + $0x1f8] sm:$0xff] }
  0x49   :  { %302 = vmatprep.mubr.f32.mxu0 %v4169_v0  ;;  %373 = vmatprep.mubr.f32.mxu1 %v4169_v0  ;;  %v212_v4 = vld [vmem:[%s4818_s1 + $0x1e0] sm:$0xff]  ;;  %v214_v5 = vld [vmem:[%s4818_s1 + $0x1f0] sm:$0xff]  ;;  %v209_v6 = vld [vmem:[%s4818_s1 + $0x1c8] sm:$0xff]  ;;  %vm382_vm3 = vcmask 64512  }
  0x4a   :  { %3985 = vset.pattern.permute.xlu0 %v4170_v1  ;;  %3986 = vset.pattern.permute.xlu1 %v4170_v1  ;;  %v211_v7 = vld [vmem:[%s4818_s1 + $0x1d8] sm:$0xff]  ;;  %v208_v8 = vld [vmem:[%s4818_s1 + $0x1c0] sm:$0xff]  ;;  %v210_v9 = vld [vmem:[%s4818_s1 + $0x1d0] sm:$0xff] }
  0x4b   :  { %238 = vmatprep.subr.mxu0 %v213_v2  ;;  %309 = vmatprep.subr.mxu1 %v215_v3  ;;  %v205_v10 = vld [vmem:[%s4818_s1 + $0x1a8] sm:$0xff]  ;;  %v207_v11 = vld [vmem:[%s4818_s1 + $0x1b8] sm:$0xff]  ;;  %v204_v12 = vld [vmem:[%s4818_s1 + $0x1a0] sm:$0xff] }
  0x4c   :  { %239 = vmatpush1.msra.mxu0 %v212_v4  ;;  %310 = vmatpush1.msra.mxu1 %v214_v5  ;;  %v206_v13 = vld [vmem:[%s4818_s1 + $0x1b0] sm:$0xff]  ;;  %v201_v14 = vld [vmem:[%s4818_s1 + $0x188] sm:$0xff]  ;;  %v203_v15 = vld [vmem:[%s4818_s1 + $0x198] sm:$0xff] }
  0x4d   :  { %240 = vmatprep.subr.mxu0 %v209_v6  ;;  %311 = vmatprep.subr.mxu1 %v211_v7  ;;  %v200_v16 = vld [vmem:[%s4818_s1 + $0x180] sm:$0xff]  ;;  %v202_v17 = vld [vmem:[%s4818_s1 + $0x190] sm:$0xff]  ;;  %v197_v18 = vld [vmem:[%s4818_s1 + $0x168] sm:$0xff]  ;;  %v120_v7 = vlaneseq }
  0x4e   :  { %241 = vmatpush1.msra.mxu0 %v208_v8  ;;  %312 = vmatpush1.msra.mxu1 %v210_v9  ;;  %v199_v19 = vld [vmem:[%s4818_s1 + $0x178] sm:$0xff]  ;;  %v196_v20 = vld [vmem:[%s4818_s1 + $0x160] sm:$0xff]  ;;  %v198_v21 = vld [vmem:[%s4818_s1 + $0x170] sm:$0xff] }
  0x4f   :  { %242 = vmatprep.subr.mxu0 %v205_v10  ;;  %313 = vmatprep.subr.mxu1 %v207_v11  ;;  %v193_v22 = vld [vmem:[%s4818_s1 + $0x148] sm:$0xff]  ;;  %v195_v23 = vld [vmem:[%s4818_s1 + $0x158] sm:$0xff]  ;;  %v192_v24 = vld [vmem:[%s4818_s1 + $0x140] sm:$0xff]  ;;  %v4473_v9 = vshrl.u32 %v120_v7, 7 }
  0x50   :  { %243 = vmatpush1.msra.mxu0 %v204_v12  ;;  %314 = vmatpush1.msra.mxu1 %v206_v13  ;;  %v194_v25 = vld [vmem:[%s4818_s1 + $0x150] sm:$0xff]  ;;  %v189_v26 = vld [vmem:[%s4818_s1 + $0x128] sm:$0xff]  ;;  %v191_v27 = vld [vmem:[%s4818_s1 + $0x138] sm:$0xff]  ;;  %v121_v13 = vand.u32 127, %v120_v7 }
  0x51   :  { %244 = vmatprep.subr.mxu0 %v201_v14  ;;  %315 = vmatprep.subr.mxu1 %v203_v15  ;;  %v188_v28 = vld [vmem:[%s4818_s1 + $0x120] sm:$0xff]  ;;  %v190_v29 = vld [vmem:[%s4818_s1 + $0x130] sm:$0xff]  ;;  %v185_v30 = vld [vmem:[%s4818_s1 + $0x108] sm:$0xff]  ;;  %v4476_v10 = vsub.s32 2, %v4473_v9  ;;  %v4479_v11 = vsub.s32 1, %v4473_v9  ;;  %v4482_v12 = vsub.s32 3, %v4473_v9 }
  0x52   :  { %245 = vmatpush1.msra.mxu0 %v200_v16  ;;  %316 = vmatpush1.msra.mxu1 %v202_v17  ;;  %v187_v31 = vld [vmem:[%s4818_s1 + $0x118] sm:$0xff]  ;;  %v184_v32 = vld [vmem:[%s4818_s1 + $0x100] sm:$0xff]  ;;  %v186_v33 = vld [vmem:[%s4818_s1 + $0x110] sm:$0xff]  ;;  %v4485_v14 = vsub.s32 0, %v4473_v9 }
  0x53   :  { %246 = vmatprep.subr.mxu0 %v197_v18  ;;  %317 = vmatprep.subr.mxu1 %v199_v19  ;;  %v181_v34 = vld [vmem:[%s4818_s1 + $0xe8] sm:$0xff]  ;;  %v183_v35 = vld [vmem:[%s4818_s1 + $0xf8] sm:$0xff]  ;;  %v180_v36 = vld [vmem:[%s4818_s1 + $0xe0] sm:$0xff] }
  0x54   :  { %247 = vmatpush1.msra.mxu0 %v196_v20  ;;  %318 = vmatpush1.msra.mxu1 %v198_v21  ;;  %v182_v37 = vld [vmem:[%s4818_s1 + $0xf0] sm:$0xff]  ;;  %v177_v38 = vld [vmem:[%s4818_s1 + $0xc8] sm:$0xff]  ;;  %v179_v39 = vld [vmem:[%s4818_s1 + $0xd8] sm:$0xff] }
  0x55   :  { %248 = vmatprep.subr.mxu0 %v193_v22  ;;  %319 = vmatprep.subr.mxu1 %v195_v23  ;;  %v176_v40 = vld [vmem:[%s4818_s1 + $0xc0] sm:$0xff]  ;;  %v178_v41 = vld [vmem:[%s4818_s1 + $0xd0] sm:$0xff]  ;;  %v173_v42 = vld [vmem:[%s4818_s1 + $0xa8] sm:$0xff] }
  0x56   :  { %249 = vmatpush1.msra.mxu0 %v192_v24  ;;  %320 = vmatpush1.msra.mxu1 %v194_v25  ;;  %v175_v43 = vld [vmem:[%s4818_s1 + $0xb8] sm:$0xff]  ;;  %v172_v44 = vld [vmem:[%s4818_s1 + $0xa0] sm:$0xff]  ;;  %v174_v45 = vld [vmem:[%s4818_s1 + $0xb0] sm:$0xff] }
  0x57   :  { %250 = vmatprep.subr.mxu0 %v189_v26  ;;  %321 = vmatprep.subr.mxu1 %v191_v27  ;;  %v169_v46 = vld [vmem:[%s4818_s1 + $0x88] sm:$0xff]  ;;  %v171_v47 = vld [vmem:[%s4818_s1 + $0x98] sm:$0xff]  ;;  %v168_v48 = vld [vmem:[%s4818_s1 + $0x80] sm:$0xff] }
  0x58   :  { %251 = vmatpush1.msra.mxu0 %v188_v28  ;;  %322 = vmatpush1.msra.mxu1 %v190_v29  ;;  %v170_v49 = vld [vmem:[%s4818_s1 + $0x90] sm:$0xff]  ;;  %v165_v50 = vld [vmem:[%s4818_s1 + $0x68] sm:$0xff]  ;;  %v167_v51 = vld [vmem:[%s4818_s1 + $0x78] sm:$0xff] }
  0x59   :  { %252 = vmatprep.subr.mxu0 %v185_v30  ;;  %323 = vmatprep.subr.mxu1 %v187_v31  ;;  %v164_v52 = vld [vmem:[%s4818_s1 + $0x60] sm:$0xff]  ;;  %v166_v53 = vld [vmem:[%s4818_s1 + $0x70] sm:$0xff]  ;;  %v161_v54 = vld [vmem:[%s4818_s1 + $0x48] sm:$0xff] }
  0x5a   :  { %253 = vmatpush1.msra.mxu0 %v184_v32  ;;  %324 = vmatpush1.msra.mxu1 %v186_v33  ;;  %v163_v55 = vld [vmem:[%s4818_s1 + $0x58] sm:$0xff]  ;;  %v160_v56 = vld [vmem:[%s4818_s1 + $0x40] sm:$0xff]  ;;  %v162_v57 = vld [vmem:[%s4818_s1 + $0x50] sm:$0xff] }
  0x5b   :  { %254 = vmatprep.subr.mxu0 %v181_v34  ;;  %325 = vmatprep.subr.mxu1 %v183_v35  ;;  %v157_v58 = vld [vmem:[%s4818_s1 + $0x28] sm:$0xff]  ;;  %v159_v59 = vld [vmem:[%s4818_s1 + $0x38] sm:$0xff]  ;;  %v156_v60 = vld [vmem:[%s4818_s1 + $0x20] sm:$0xff] }
  0x5c   :  { %255 = vmatpush1.msra.mxu0 %v180_v36  ;;  %326 = vmatpush1.msra.mxu1 %v182_v37  ;;  %v158_v61 = vld [vmem:[%s4818_s1 + $0x30] sm:$0xff]  ;;  %v153_v62 = vld [vmem:[%s4818_s1 + $0x8] sm:$0xff]  ;;  %v155_v63 = vld [vmem:[%s4818_s1 + $0x18] sm:$0xff] }
  0x5d   :  { %256 = vmatprep.subr.mxu0 %v177_v38  ;;  %327 = vmatprep.subr.mxu1 %v179_v39  ;;  %v152_v1 = vld [vmem:[%s4818_s1] sm:$0xff]  ;;  %v154_v2 = vld [vmem:[%s4818_s1 + $0x10] sm:$0xff] }
  0x5e   :  { %257 = vmatpush1.msra.mxu0 %v176_v40  ;;  %328 = vmatpush1.msra.mxu1 %v178_v41  ;;  %v151_v3 = vld [vmem:[%s4817_s0] sm:$0xff] }
  0x5f   :  { %258 = vmatprep.subr.mxu0 %v173_v42  ;;  %329 = vmatprep.subr.mxu1 %v175_v43  ;;  %v122_v4 = vld [vmem:[%s4826_s9] sm:$0xff] }
  0x60   :  { %259 = vmatpush1.msra.mxu0 %v172_v44  ;;  %330 = vmatpush1.msra.mxu1 %v174_v45  ;;  %v127_v5 = vld [vmem:[%s4827_s10] sm:$0xff] }
  0x61   :  { %260 = vmatprep.subr.mxu0 %v169_v46  ;;  %331 = vmatprep.subr.mxu1 %v171_v47  ;;  %v150_v6 = vld [vmem:[%s4830_s13] sm:$0xff] }
  0x62   :  { %261 = vmatpush1.msra.mxu0 %v168_v48  ;;  %332 = vmatpush1.msra.mxu1 %v170_v49  ;;  %v216_v16 = vld [vmem:[%s4819_s2] sm:$0xf] }
  0x63   :  { %262 = vmatprep.subr.mxu0 %v165_v50  ;;  %333 = vmatprep.subr.mxu1 %v167_v51  ;;  %v229_v17 = vrot.slane %v216_v16, %v4476_v10  ;;  %v225_v18 = vrot.slane %v216_v16, %v4479_v11  ;;  %v233_v19 = vrot.slane %v216_v16, %v4482_v12  ;;  %v3942_v30 = vld [vmem:[%s4828_s11] ss:$0 sm:$0xff]  ;;  %s4171_s11 = smov [#allocation13]  }
  0x64   :  { %263 = vmatpush1.msra.mxu0 %v164_v52  ;;  %334 = vmatpush1.msra.mxu1 %v166_v53  ;;  %v221_v20 = vrot.slane %v216_v16, %v4485_v14  ;;  %v3943_v31 = vld [vmem:[%s4829_s12] ss:$0 sm:$0xff]  ;;  %vm141_vm4 = vcmp.ge.s32.totalorder %v4473_v9, %v3942_v30  ;;  %v381_v16 = vld [vmem:[#allocation5] sm:$0xf]  ;;  %s3930_s12 = sshll.u32 %s4171_s11, 4  ;;  %s3931_s12 = int_to_ptr.vmem [resolvable:$true] %s3930_s12 }
  0x65   :  { %264 = vmatprep.subr.mxu0 %v161_v54  ;;  %335 = vmatprep.subr.mxu1 %v163_v55  ;;  %vm147_vm5 = vcmp.lt.s32.totalorder %v4473_v9, %v3943_v31  ;;  %v877_v30 = vrot.slane %v381_v16, %v4485_v14  ;;  %s4131_s27 = scalar_lea.vmem %s3931_s12, 1024  ;;  %p4136_p3 = scmp.lt.s32.totalorder %s3931_s12, %s3931_s12 }
  0x66   :  { %265 = vmatpush1.msra.mxu0 %v160_v56  ;;  %336 = vmatpush1.msra.mxu1 %v162_v57  ;;  %vm148_vm6 = vmand %vm141_vm4, %vm147_vm5  ;;  %p4132_p2 = scmp.ne.s32.totalorder %s3931_s12, %s4131_s27  ;;  %p4137_p4 = scmp.lt.s32.totalorder %s4131_s27, %s4131_s27 }
  0x67   :  { %266 = vmatprep.subr.mxu0 %v157_v58  ;;  %337 = vmatprep.subr.mxu1 %v159_v59  ;;  %v4532_v39 = vsel %vm148_vm6, 1.0, %v4169_v0 }
  0x68   :  { %267 = vmatpush1.msra.mxu0 %v156_v60  ;;  %338 = vmatpush1.msra.mxu1 %v158_v61  ;;  %p4138_p5 = por %p4137_p4, %p4136_p3 }
  0x69   :  { %268 = vmatprep.subr.mxu0 %v153_v62  ;;  %339 = vmatprep.subr.mxu1 %v155_v63 }
  0x6a   :  { %269 = vmatpush1.msra.mxu0 %v152_v1  ;;  %340 = vmatpush1.msra.mxu1 %v154_v2  ;;  %p4139_p6 = pnand %p4138_p5, %p4132_p2 }
  0x6b   :  { %303 = vmatmul.mubr.f32.vlgmr.msra.gmra.mxu0 %v151_v3  ;;  %374 = vmatmul.mubr.f32.vlgmr.msra.gmra.mxu1 %v151_v3  ;;  %v380_v3 = vld [vmem:[#allocation2] sm:$0xf] }
  0x6c   :  { %124 = vperm.xlu0 %3985, %v122_v4   ;;  %450 = vmatprep.mubr.f32.mxu0 %v4169_v0  ;;  %v848_v4 = vrot.slane %v380_v3, %v4485_v14 }
  0x6d   :  { %521 = vmatprep.mubr.f32.mxu1 %v4169_v0  ;;  %530 = vperm.xlu1 %3986, %v150_v6   ;;  %v852_v6 = vrot.slane %v380_v3, %v4479_v11 }
  0x70   :  { %129 = vperm.xlu0 %3985, %v127_v5   ;;  %v856_v5 = vrot.slane %v380_v3, %v4476_v10 }
  0xe7   :  { %v125_v8 = vpop.permute.xlu0 %124 }
  0xe8   :  { %vm126_vm0 = vcmp.ge.s32.totalorder %v121_v13, %v125_v8  ;;  %v4523_v34 = vpop.permute.xlu1 %530  ;;  %v860_v8 = vrot.slane %v380_v3, %v4482_v12  ;;  %v1523_v3 = vld [vmem:[#allocation7 + $0xa48] sm:$0xff] }
  0xeb   :  { %v130_v15 = vpop.permute.xlu0 %129 }
  0xec   :  { %vm131_vm1 = vcmp.lt.s32.totalorder %v121_v13, %v130_v15 }
  0xed   :  { %vm132_vm2 = vmand %vm126_vm0, %vm131_vm1 }
  0xee   :  { %v4505_v29 = vsel %vm132_vm2, 1.0, %v4169_v0 }
 0x12b   :  { %v304_v21 = vpop.f32.mrf.mxu0  ;;  %v375_v22 = vpop.f32.mrf.mxu1 }
 0x12c   :  { %v4494_v23 = vadd.f32 %v375_v22, %v229_v17  ;;  %v4500_v28 = vadd.f32 %v304_v21, %v221_v20  ;;  %v881_v21 = vrot.slane %v381_v16, %v4479_v11 }
 0x12d   :  { %v306_v24 = vpop.f32.mrf.mxu0  ;;  %v377_v25 = vpop.f32.mrf.mxu1 }
 0x12e   :  { %v4496_v26 = vadd.f32 %v306_v24, %v225_v18  ;;  %v4498_v27 = vadd.f32 %v377_v25, %v233_v19  ;;  %v889_v24 = vrot.slane %v381_v16, %v4482_v12 }
 0x130   :  { %416 = vmatprep.subr.mxu0 %v4496_v26  ;;  %487 = vmatprep.subr.mxu1 %v4498_v27 }
 0x131   :  { %417 = vmatpush1.msra.mxu0 %v4500_v28  ;;  %488 = vmatpush1.msra.mxu1 %v4494_v23 }
 0x132   :  { %3944 = vmatmul.mubr.msk.f32.vlgmr.msra.gmra.mxu0 %vm382_vm3, %v4505_v29  ;;  %3945 = vmatmul.mubr.msk.f32.vlgmr.msra.gmra.mxu1 %vm382_vm3, %v4505_v29 }
 0x133   :  { %604 = vmatprep.mubr.f32.mxu0 %v4169_v0  ;;  %675 = vmatprep.mubr.f32.mxu1 %v4169_v0 }
 0x1f2   :  { %v452_v32 = vpop.f32.mrf.mxu0  ;;  %v523_v33 = vpop.f32.mrf.mxu1 }
 0x1f3   :  { %v533_v40 = vmul.f32 %v4523_v34, %v452_v32  ;;  %v4536_v41 = vmul.f32 %v4523_v34, %v523_v33  ;;  %v885_v33 = vrot.slane %v381_v16, %v4476_v10  ;;  %v1507_v16 = vld [vmem:[#allocation7 + $0x9c8] sm:$0xff] }
 0x1f4   :  { %v454_v35 = vpop.f32.mrf.mxu0  ;;  %v525_v36 = vpop.f32.mrf.mxu1 }
 0x1f5   :  { %v4526_v37 = vmul.f32 %v4523_v34, %v454_v35  ;;  %v4529_v38 = vmul.f32 %v4523_v34, %v525_v36 }
 0x1f7   :  { %570 = vmatprep.subr.mxu0 %v4526_v37  ;;  %641 = vmatprep.subr.mxu1 %v4529_v38 }
 0x1f8   :  { %571 = vmatpush1.msra.mxu0 %v533_v40  ;;  %642 = vmatpush1.msra.mxu1 %v4536_v41 }
 0x1f9   :  { %3946 = vmatmul.mubr.msk.f32.vlgmr.msra.gmra.mxu0 %vm382_vm3, %v4532_v39  ;;  %3947 = vmatmul.mubr.msk.f32.vlgmr.msra.gmra.mxu1 %vm382_vm3, %v4532_v39 }
 0x1fa   :  { %754 = vmatprep.mubr.f32.mxu0 %v4169_v0  ;;  %825 = vmatprep.mubr.f32.mxu1 %v4169_v0 }
 0x2b9   :  { %v606_v42 = vpop.f32.mrf.mxu0  ;;  %v677_v43 = vpop.f32.mrf.mxu1 }
 0x2ba   :  { %v682_v44 = vsub.f32 %v4500_v28, %v606_v42  ;;  %v684_v45 = vsub.f32 %v4494_v23, %v677_v43  ;;  %v1314_v43 = vld [vmem:[#allocation7 + $0x3c0] sm:$0xff] }
 0x2bb   :  { %v608_v46 = vpop.f32.mrf.mxu0  ;;  %v679_v47 = vpop.f32.mrf.mxu1 }
 0x2bc   :  { %v683_v48 = vsub.f32 %v4496_v26, %v608_v46  ;;  %v685_v49 = vsub.f32 %v4498_v27, %v679_v47  ;;  %v686_v52 = vmul.f32 %v682_v44, %v682_v44  ;;  %v688_v53 = vmul.f32 %v684_v45, %v684_v45  ;;  %v1570_v44 = vld [vmem:[#allocation7 + $0xbc0] sm:$0xff]  ;;  %v1307_v45 = vld [vmem:[#allocation7 + $0x388] sm:$0xff] }
 0x2bd   :  { %v1563_v46 = vld [vmem:[#allocation7 + $0xb88] sm:$0xff]  ;;  %v1306_v47 = vld [vmem:[#allocation7 + $0x380] sm:$0xff] }
 0x2be   :  { %v687_v50 = vmul.f32 %v683_v48, %v683_v48  ;;  %v689_v51 = vmul.f32 %v685_v49, %v685_v49  ;;  %v1562_v48 = vld [vmem:[#allocation7 + $0xb80] sm:$0xff]  ;;  %v1299_v49 = vld [vmem:[#allocation7 + $0x348] sm:$0xff] }
 0x2c0   :  { %720 = vmatprep.subr.mxu0 %v687_v50  ;;  %791 = vmatprep.subr.mxu1 %v689_v51  ;;  %v1555_v50 = vld [vmem:[#allocation7 + $0xb48] sm:$0xff]  ;;  %v1298_v51 = vld [vmem:[#allocation7 + $0x340] sm:$0xff] }
 0x2c1   :  { %721 = vmatpush1.msra.mxu0 %v686_v52  ;;  %792 = vmatpush1.msra.mxu1 %v688_v53  ;;  %v1554_v52 = vld [vmem:[#allocation7 + $0xb40] sm:$0xff]  ;;  %v1291_v53 = vld [vmem:[#allocation7 + $0x308] sm:$0xff] }
 0x2c2   :  { %3948 = vmatmul.mubr.msk.f32.vlgmr.msra.gmra.mxu0 %vm382_vm3, %v4505_v29  ;;  %3949 = vmatmul.mubr.msk.f32.vlgmr.msra.gmra.mxu1 %vm382_vm3, %v4505_v29 }
 0x2c3   :  { %962 = vmatprep.mubr.f32.mxu0 %v4169_v0  ;;  %1033 = vmatprep.mubr.f32.mxu1 %v4169_v0 }
 0x382   :  { %v756_v54 = vpop.f32.mrf.mxu0  ;;  %v827_v55 = vpop.f32.mrf.mxu1 }
 0x383   :  { %v832_v56 = vmul.f32 %v756_v54, %v4523_v34  ;;  %v834_v57 = vmul.f32 %v827_v55, %v4523_v34  ;;  %v1547_v54 = vld [vmem:[#allocation7 + $0xb08] sm:$0xff]  ;;  %v1290_v55 = vld [vmem:[#allocation7 + $0x300] sm:$0xff] }
 0x384   :  { %v758_v58 = vpop.f32.mrf.mxu0  ;;  %v829_v59 = vpop.f32.mrf.mxu1 }
 0x385   :  { %v836_v60 = vadd.f32 1e-05, %v832_v56  ;;  %v838_v61 = vadd.f32 1e-05, %v834_v57  ;;  %v833_v62 = vmul.f32 %v758_v58, %v4523_v34  ;;  %v835_v63 = vmul.f32 %v829_v59, %v4523_v34  ;;  %v1546_v56 = vld [vmem:[#allocation7 + $0xb00] sm:$0xff]  ;;  %v1283_v57 = vld [vmem:[#allocation7 + $0x2c8] sm:$0xff] }
 0x386   :  { %v1539_v58 = vld [vmem:[#allocation7 + $0xac8] sm:$0xff]  ;;  %v1282_v59 = vld [vmem:[#allocation7 + $0x2c0] sm:$0xff] }
 0x387   :  { %3987 = vrsqrt.f32 %v836_v60  ;;  %v837_v1 = vadd.f32 1e-05, %v833_v62  ;;  %v839_v2 = vadd.f32 1e-05, %v835_v63  ;;  %v1538_v60 = vld [vmem:[#allocation7 + $0xac0] sm:$0xff]  ;;  %v1531_v62 = vld [vmem:[#allocation7 + $0xa88] sm:$0xff] }
 0x388   :  { %3989 = vrsqrt.f32 %v838_v61  ;;  %v1275_v61 = vld [vmem:[#allocation7 + $0x288] sm:$0xff]  ;;  %v1274_v63 = vld [vmem:[#allocation7 + $0x280] sm:$0xff] }
 0x389   :  { %3991 = vrsqrt.f32 %v837_v1  ;;  %v1530_v1 = vld [vmem:[#allocation7 + $0xa80] sm:$0xff] }
 0x38a   :  { %3993 = vrsqrt.f32 %v839_v2  ;;  %v1267_v2 = vld [vmem:[#allocation7 + $0x248] sm:$0xff] }
 0x394   :  { %v3988_v7 = vpop.eup %3987 }
 0x395   :  { %v3990_v13 = vpop.eup %3989  ;;  %v865_v15 = vmul.f32 %v3988_v7, %v848_v4  ;;  %v1266_v4 = vld [vmem:[#allocation7 + $0x240] sm:$0xff]  ;;  %v1515_v7 = vld [vmem:[#allocation7 + $0xa08] sm:$0xff] }
 0x396   :  { %v3992_v17 = vpop.eup %3991  ;;  %v867_v18 = vmul.f32 %v3990_v13, %v856_v5  ;;  %v1522_v5 = vld [vmem:[#allocation7 + $0xa40] sm:$0xff] }
 0x397   :  { %v3994_v19 = vpop.eup %3993  ;;  %v866_v20 = vmul.f32 %v3992_v17, %v852_v6  ;;  %v869_v25 = vmul.f32 %v865_v15, %v533_v40  ;;  %v1259_v6 = vld [vmem:[#allocation7 + $0x208] sm:$0xff]  ;;  %v1514_v13 = vld [vmem:[#allocation7 + $0xa00] sm:$0xff] }
 0x398   :  { %v868_v22 = vmul.f32 %v3994_v19, %v860_v8  ;;  %v871_v32 = vmul.f32 %v867_v18, %v4536_v41  ;;  %v1315_v41 = vld [vmem:[#allocation7 + $0x3c8] sm:$0xff]  ;;  %v1258_v8 = vld [vmem:[#allocation7 + $0x200] sm:$0xff] }
 0x399   :  { %928 = vmatprep.subr.mxu0 %v866_v20  ;;  %v870_v31 = vmul.f32 %v866_v20, %v4526_v37  ;;  %v894_v42 = vsub.f32 %v877_v30, %v869_v25  ;;  %v1250_v17 = vld [vmem:[#allocation7 + $0x1c0] sm:$0xff]  ;;  %v1243_v19 = vld [vmem:[#allocation7 + $0x188] sm:$0xff] }
 0x39a   :  { %999 = vmatprep.subr.mxu1 %v868_v22  ;;  %929 = vmatpush1.msra.mxu0 %v865_v15  ;;  %v872_v35 = vmul.f32 %v868_v22, %v4529_v38  ;;  %v896_v37 = vsub.f32 %v885_v33, %v871_v32  ;;  %v1571_v38 = vld [vmem:[#allocation7 + $0xbc8] sm:$0xff]  ;;  %v1498_v22 = vld [vmem:[#allocation7 + $0x980] sm:$0xff] }
 0x39b   :  { %1000 = vmatpush1.msra.mxu1 %v867_v18  ;;  %3950 = vmatmul.mubr.msk.f32.vlgmr.msra.gmra.mxu0 %vm382_vm3, %v4532_v39  ;;  %v895_v36 = vsub.f32 %v881_v21, %v870_v31  ;;  %v1251_v15 = vld [vmem:[#allocation7 + $0x1c8] sm:$0xff]  ;;  %v1506_v18 = vld [vmem:[#allocation7 + $0x9c0] sm:$0xff] }
 0x39c   :  { %3951 = vmatmul.mubr.msk.f32.vlgmr.msra.gmra.mxu1 %vm382_vm3, %v4532_v39  ;;  %v897_v40 = vsub.f32 %v889_v24, %v872_v35  ;;  %1104 = vmatprep.mubr.f32.mxu0 %v4169_v0  ;;  %v1499_v20 = vld [vmem:[#allocation7 + $0x988] sm:$0xff]  ;;  %v1242_v21 = vld [vmem:[#allocation7 + $0x180] sm:$0xff] }
 0x39d   :  { %1070 = vmatprep.subr.mxu0 %v895_v36  ;;  %1175 = vmatprep.mubr.f32.mxu1 %v4169_v0  ;;  %v1235_v24 = vld [vmem:[#allocation7 + $0x148] sm:$0xff]  ;;  %v1234_v30 = vld [vmem:[#allocation7 + $0x140] sm:$0xff] }
 0x39e   :  { %1141 = vmatprep.subr.mxu1 %v897_v40  ;;  %1071 = vmatpush1.msra.mxu0 %v894_v42  ;;  %v1491_v25 = vld [vmem:[#allocation7 + $0x948] sm:$0xff]  ;;  %v1490_v31 = vld [vmem:[#allocation7 + $0x940] sm:$0xff] }
 0x39f   :  { %1142 = vmatpush1.msra.mxu1 %v896_v37  ;;  %3952 = vmatmul.mubr.msk.f32.vlgmr.msra.gmra.mxu0 %vm382_vm3, %v4532_v39  ;;  %v1227_v32 = vld [vmem:[#allocation7 + $0x108] sm:$0xff]  ;;  %v1226_v35 = vld [vmem:[#allocation7 + $0x100] sm:$0xff] }
 0x3a0   :  { %3953 = vmatmul.mubr.msk.f32.vlgmr.msra.gmra.mxu1 %vm382_vm3, %v4532_v39  ;;  %1748 = vmatprep.subr.mxu0 %v1315_v41  ;;  %v1483_v33 = vld [vmem:[#allocation7 + $0x908] sm:$0xff]  ;;  %v1482_v36 = vld [vmem:[#allocation7 + $0x900] sm:$0xff] }
 0x3a1   :  { %1819 = vmatprep.subr.mxu1 %v1571_v38  ;;  %1749 = vmatpush1.msra.mxu0 %v1314_v43  ;;  %v1219_v40 = vld [vmem:[#allocation7 + $0xc8] sm:$0xff]  ;;  %v1218_v37 = vld [vmem:[#allocation7 + $0xc0] sm:$0xff] }
 0x3a2   :  { %1820 = vmatpush1.msra.mxu1 %v1570_v44  ;;  %1750 = vmatprep.subr.mxu0 %v1307_v45  ;;  %v1475_v42 = vld [vmem:[#allocation7 + $0x8c8] sm:$0xff]  ;;  %v1474_v41 = vld [vmem:[#allocation7 + $0x8c0] sm:$0xff] }
 0x3a3   :  { %1821 = vmatprep.subr.mxu1 %v1563_v46  ;;  %1751 = vmatpush1.msra.mxu0 %v1306_v47  ;;  %v1211_v38 = vld [vmem:[#allocation7 + $0x88] sm:$0xff]  ;;  %v1210_v44 = vld [vmem:[#allocation7 + $0x80] sm:$0xff] }
 0x3a4   :  { %1822 = vmatpush1.msra.mxu1 %v1562_v48  ;;  %1752 = vmatprep.subr.mxu0 %v1299_v49  ;;  %v1467_v43 = vld [vmem:[#allocation7 + $0x888] sm:$0xff]  ;;  %v1466_v45 = vld [vmem:[#allocation7 + $0x880] sm:$0xff] }
 0x3a5   :  { %1823 = vmatprep.subr.mxu1 %v1555_v50  ;;  %1753 = vmatpush1.msra.mxu0 %v1298_v51  ;;  %v1203_v46 = vld [vmem:[#allocation7 + $0x48] sm:$0xff]  ;;  %v1202_v48 = vld [vmem:[#allocation7 + $0x40] sm:$0xff] }
 0x3a6   :  { %1824 = vmatpush1.msra.mxu1 %v1554_v52  ;;  %1754 = vmatprep.subr.mxu0 %v1291_v53  ;;  %v1459_v47 = vld [vmem:[#allocation7 + $0x848] sm:$0xff]  ;;  %v1458_v49 = vld [vmem:[#allocation7 + $0x840] sm:$0xff] }
 0x3a7   :  { %1825 = vmatprep.subr.mxu1 %v1547_v54  ;;  %1755 = vmatpush1.msra.mxu0 %v1290_v55  ;;  %v1195_v50 = vld [vmem:[#allocation7 + $0x8] sm:$0xff]  ;;  %v1194_v52 = vld [vmem:[#allocation7] sm:$0xff] }
 0x3a8   :  { %1826 = vmatpush1.msra.mxu1 %v1546_v56  ;;  %1756 = vmatprep.subr.mxu0 %v1283_v57  ;;  %v1451_v51 = vld [vmem:[#allocation7 + $0x808] sm:$0xff]  ;;  %v1450_v53 = vld [vmem:[#allocation7 + $0x800] sm:$0xff] }
 0x3a9   :  { %1827 = vmatprep.subr.mxu1 %v1539_v58  ;;  %1757 = vmatpush1.msra.mxu0 %v1282_v59  ;;  %v1443_v54 = vld [vmem:[#allocation7 + $0x7c8] sm:$0xff]  ;;  %v1442_v56 = vld [vmem:[#allocation7 + $0x7c0] sm:$0xff] }
 0x3aa   :  { %1828 = vmatpush1.msra.mxu1 %v1538_v60  ;;  %1758 = vmatprep.subr.mxu0 %v1275_v61  ;;  %v1699_v55 = vld [vmem:[#allocation7 + $0xfc8] sm:$0xff]  ;;  %v1698_v57 = vld [vmem:[#allocation7 + $0xfc0] sm:$0xff] }
 0x3ab   :  { %1829 = vmatprep.subr.mxu1 %v1531_v62  ;;  %1759 = vmatpush1.msra.mxu0 %v1274_v63  ;;  %v1435_v58 = vld [vmem:[#allocation7 + $0x788] sm:$0xff]  ;;  %v1434_v60 = vld [vmem:[#allocation7 + $0x780] sm:$0xff] }
 0x3ac   :  { %1830 = vmatpush1.msra.mxu1 %v1530_v1  ;;  %1760 = vmatprep.subr.mxu0 %v1267_v2  ;;  %v1691_v59 = vld [vmem:[#allocation7 + $0xf88] sm:$0xff]  ;;  %v1690_v61 = vld [vmem:[#allocation7 + $0xf80] sm:$0xff] }
 0x3ad   :  { %1831 = vmatprep.subr.mxu1 %v1523_v3  ;;  %1761 = vmatpush1.msra.mxu0 %v1266_v4  ;;  %v1427_v62 = vld [vmem:[#allocation7 + $0x748] sm:$0xff]  ;;  %v1426_v1 = vld [vmem:[#allocation7 + $0x740] sm:$0xff] }
 0x3ae   :  { %1832 = vmatpush1.msra.mxu1 %v1522_v5  ;;  %1762 = vmatprep.subr.mxu0 %v1259_v6  ;;  %v1683_v63 = vld [vmem:[#allocation7 + $0xf48] sm:$0xff]  ;;  %v1682_v2 = vld [vmem:[#allocation7 + $0xf40] sm:$0xff] }
 0x3af   :  { %1833 = vmatprep.subr.mxu1 %v1515_v7  ;;  %1763 = vmatpush1.msra.mxu0 %v1258_v8  ;;  %v1419_v3 = vld [vmem:[#allocation7 + $0x708] sm:$0xff]  ;;  %v1418_v5 = vld [vmem:[#allocation7 + $0x700] sm:$0xff] }
 0x3b0   :  { %1834 = vmatpush1.msra.mxu1 %v1514_v13  ;;  %1764 = vmatprep.subr.mxu0 %v1251_v15  ;;  %v1675_v4 = vld [vmem:[#allocation7 + $0xf08] sm:$0xff]  ;;  %v1674_v6 = vld [vmem:[#allocation7 + $0xf00] sm:$0xff] }
 0x3b1   :  { %1835 = vmatprep.subr.mxu1 %v1507_v16  ;;  %1765 = vmatpush1.msra.mxu0 %v1250_v17  ;;  %v1411_v7 = vld [vmem:[#allocation7 + $0x6c8] sm:$0xff]  ;;  %v1410_v13 = vld [vmem:[#allocation7 + $0x6c0] sm:$0xff] }
 0x3b2   :  { %1836 = vmatpush1.msra.mxu1 %v1506_v18  ;;  %1766 = vmatprep.subr.mxu0 %v1243_v19  ;;  %v1667_v8 = vld [vmem:[#allocation7 + $0xec8] sm:$0xff]  ;;  %v1666_v15 = vld [vmem:[#allocation7 + $0xec0] sm:$0xff] }
 0x3b3   :  { %1837 = vmatprep.subr.mxu1 %v1499_v20  ;;  %1767 = vmatpush1.msra.mxu0 %v1242_v21  ;;  %v1403_v16 = vld [vmem:[#allocation7 + $0x688] sm:$0xff]  ;;  %v1402_v18 = vld [vmem:[#allocation7 + $0x680] sm:$0xff] }
 0x3b4   :  { %1838 = vmatpush1.msra.mxu1 %v1498_v22  ;;  %1768 = vmatprep.subr.mxu0 %v1235_v24  ;;  %v1659_v17 = vld [vmem:[#allocation7 + $0xe88] sm:$0xff]  ;;  %v1658_v19 = vld [vmem:[#allocation7 + $0xe80] sm:$0xff] }
 0x3b5   :  { %1839 = vmatprep.subr.mxu1 %v1491_v25  ;;  %1769 = vmatpush1.msra.mxu0 %v1234_v30  ;;  %v1395_v20 = vld [vmem:[#allocation7 + $0x648] sm:$0xff]  ;;  %v1394_v22 = vld [vmem:[#allocation7 + $0x640] sm:$0xff] }
 0x3b6   :  { %1840 = vmatpush1.msra.mxu1 %v1490_v31  ;;  %1770 = vmatprep.subr.mxu0 %v1227_v32  ;;  %v1651_v21 = vld [vmem:[#allocation7 + $0xe48] sm:$0xff]  ;;  %v1650_v24 = vld [vmem:[#allocation7 + $0xe40] sm:$0xff] }
 0x3b7   :  { %1841 = vmatprep.subr.mxu1 %v1483_v33  ;;  %1771 = vmatpush1.msra.mxu0 %v1226_v35  ;;  %v1387_v25 = vld [vmem:[#allocation7 + $0x608] sm:$0xff]  ;;  %v1386_v31 = vld [vmem:[#allocation7 + $0x600] sm:$0xff] }
 0x3b8   :  { %1842 = vmatpush1.msra.mxu1 %v1482_v36  ;;  %1772 = vmatprep.subr.mxu0 %v1219_v40  ;;  %v1643_v30 = vld [vmem:[#allocation7 + $0xe08] sm:$0xff]  ;;  %v1642_v32 = vld [vmem:[#allocation7 + $0xe00] sm:$0xff] }
 0x3b9   :  { %1843 = vmatprep.subr.mxu1 %v1475_v42  ;;  %1773 = vmatpush1.msra.mxu0 %v1218_v37  ;;  %v1379_v33 = vld [vmem:[#allocation7 + $0x5c8] sm:$0xff]  ;;  %v1378_v36 = vld [vmem:[#allocation7 + $0x5c0] sm:$0xff] }
 0x3ba   :  { %1844 = vmatpush1.msra.mxu1 %v1474_v41  ;;  %1774 = vmatprep.subr.mxu0 %v1211_v38  ;;  %v1635_v35 = vld [vmem:[#allocation7 + $0xdc8] sm:$0xff]  ;;  %v1634_v40 = vld [vmem:[#allocation7 + $0xdc0] sm:$0xff] }
 0x3bb   :  { %1845 = vmatprep.subr.mxu1 %v1467_v43  ;;  %1775 = vmatpush1.msra.mxu0 %v1210_v44  ;;  %v1371_v42 = vld [vmem:[#allocation7 + $0x588] sm:$0xff]  ;;  %v1370_v41 = vld [vmem:[#allocation7 + $0x580] sm:$0xff] }
 0x3bc   :  { %1846 = vmatpush1.msra.mxu1 %v1466_v45  ;;  %1776 = vmatprep.subr.mxu0 %v1203_v46  ;;  %v1627_v37 = vld [vmem:[#allocation7 + $0xd88] sm:$0xff]  ;;  %v1626_v38 = vld [vmem:[#allocation7 + $0xd80] sm:$0xff] }
 0x3bd   :  { %1847 = vmatprep.subr.mxu1 %v1459_v47  ;;  %1777 = vmatpush1.msra.mxu0 %v1202_v48  ;;  %v1363_v43 = vld [vmem:[#allocation7 + $0x548] sm:$0xff]  ;;  %v1362_v45 = vld [vmem:[#allocation7 + $0x540] sm:$0xff] }
 0x3be   :  { %1848 = vmatpush1.msra.mxu1 %v1458_v49  ;;  %1778 = vmatprep.subr.mxu0 %v1195_v50  ;;  %v1619_v44 = vld [vmem:[#allocation7 + $0xd48] sm:$0xff]  ;;  %v1618_v46 = vld [vmem:[#allocation7 + $0xd40] sm:$0xff] }
 0x3bf   :  { %1849 = vmatprep.subr.mxu1 %v1451_v51  ;;  %1779 = vmatpush1.msra.mxu0 %v1194_v52  ;;  %v1355_v47 = vld [vmem:[#allocation7 + $0x508] sm:$0xff]  ;;  %v1354_v49 = vld [vmem:[#allocation7 + $0x500] sm:$0xff] }
 0x3c0   :  { %1850 = vmatpush1.msra.mxu1 %v1450_v53  ;;  %1780 = vmatprep.subr.mxu0 %v1443_v54  ;;  %v1611_v48 = vld [vmem:[#allocation7 + $0xd08] sm:$0xff]  ;;  %v1610_v50 = vld [vmem:[#allocation7 + $0xd00] sm:$0xff] }
 0x3c1   :  { %1851 = vmatprep.subr.mxu1 %v1699_v55  ;;  %1781 = vmatpush2.msra.mxu0 %v1442_v56  ;;  %v1347_v51 = vld [vmem:[#allocation7 + $0x4c8] sm:$0xff]  ;;  %v1346_v53 = vld [vmem:[#allocation7 + $0x4c0] sm:$0xff] }
 0x3c2   :  { %1852 = vmatpush2.msra.mxu1 %v1698_v57  ;;  %1782 = vmatprep.subr.mxu0 %v1435_v58  ;;  %v1603_v52 = vld [vmem:[#allocation7 + $0xcc8] sm:$0xff]  ;;  %v1602_v54 = vld [vmem:[#allocation7 + $0xcc0] sm:$0xff] }
 0x3c3   :  { %1853 = vmatprep.subr.mxu1 %v1691_v59  ;;  %1783 = vmatpush2.msra.mxu0 %v1434_v60  ;;  %v1339_v55 = vld [vmem:[#allocation7 + $0x488] sm:$0xff]  ;;  %v1338_v57 = vld [vmem:[#allocation7 + $0x480] sm:$0xff] }
 0x3c4   :  { %1854 = vmatpush2.msra.mxu1 %v1690_v61  ;;  %1784 = vmatprep.subr.mxu0 %v1427_v62  ;;  %v1595_v56 = vld [vmem:[#allocation7 + $0xc88] sm:$0xff]  ;;  %v1594_v58 = vld [vmem:[#allocation7 + $0xc80] sm:$0xff] }
 0x3c5   :  { %1855 = vmatprep.subr.mxu1 %v1683_v63  ;;  %1785 = vmatpush2.msra.mxu0 %v1426_v1  ;;  %v1331_v59 = vld [vmem:[#allocation7 + $0x448] sm:$0xff]  ;;  %v1330_v61 = vld [vmem:[#allocation7 + $0x440] sm:$0xff] }
 0x3c6   :  { %1856 = vmatpush2.msra.mxu1 %v1682_v2  ;;  %1786 = vmatprep.subr.mxu0 %v1419_v3  ;;  %v1587_v60 = vld [vmem:[#allocation7 + $0xc48] sm:$0xff]  ;;  %v1586_v62 = vld [vmem:[#allocation7 + $0xc40] sm:$0xff] }
 0x3c7   :  { %1857 = vmatprep.subr.mxu1 %v1675_v4  ;;  %1787 = vmatpush2.msra.mxu0 %v1418_v5  ;;  %v1323_v63 = vld [vmem:[#allocation7 + $0x408] sm:$0xff]  ;;  %v1322_v2 = vld [vmem:[#allocation7 + $0x400] sm:$0xff]  ;;  %v1317_v4 = vld [vmem:[#allocation7 + $0x3d8] sm:$0xff] }
 0x3c8   :  { %1858 = vmatpush2.msra.mxu1 %v1674_v6  ;;  %1788 = vmatprep.subr.mxu0 %v1411_v7  ;;  %v1579_v1 = vld [vmem:[#allocation7 + $0xc08] sm:$0xff]  ;;  %v1578_v3 = vld [vmem:[#allocation7 + $0xc00] sm:$0xff]  ;;  %v1573_v5 = vld [vmem:[#allocation7 + $0xbd8] sm:$0xff] }
 0x3c9   :  { %1859 = vmatprep.subr.mxu1 %v1667_v8  ;;  %1789 = vmatpush2.msra.mxu0 %v1410_v13 }
 0x3ca   :  { %1860 = vmatpush2.msra.mxu1 %v1666_v15  ;;  %1790 = vmatprep.subr.mxu0 %v1403_v16 }
 0x3cb   :  { %1861 = vmatprep.subr.mxu1 %v1659_v17  ;;  %1791 = vmatpush2.msra.mxu0 %v1402_v18 }
 0x3cc   :  { %1862 = vmatpush2.msra.mxu1 %v1658_v19  ;;  %1792 = vmatprep.subr.mxu0 %v1395_v20 }
 0x3cd   :  { %1863 = vmatprep.subr.mxu1 %v1651_v21  ;;  %1793 = vmatpush2.msra.mxu0 %v1394_v22 }
 0x3ce   :  { %1864 = vmatpush2.msra.mxu1 %v1650_v24  ;;  %1794 = vmatprep.subr.mxu0 %v1387_v25 }
 0x3cf   :  { %1865 = vmatprep.subr.mxu1 %v1643_v30  ;;  %1795 = vmatpush2.msra.mxu0 %v1386_v31 }
 0x3d0   :  { %1866 = vmatpush2.msra.mxu1 %v1642_v32  ;;  %1796 = vmatprep.subr.mxu0 %v1379_v33 }
 0x3d1   :  { %1867 = vmatprep.subr.mxu1 %v1635_v35  ;;  %1797 = vmatpush2.msra.mxu0 %v1378_v36 }
 0x3d2   :  { %1868 = vmatpush2.msra.mxu1 %v1634_v40  ;;  %1798 = vmatprep.subr.mxu0 %v1371_v42  ;;  %v1308_v40 = vld [vmem:[#allocation7 + $0x390] sm:$0xff] }
 0x3d3   :  { %1869 = vmatprep.subr.mxu1 %v1627_v37  ;;  %1799 = vmatpush2.msra.mxu0 %v1370_v41  ;;  %v1564_v42 = vld [vmem:[#allocation7 + $0xb90] sm:$0xff]  ;;  %v1301_v37 = vld [vmem:[#allocation7 + $0x358] sm:$0xff] }
 0x3d4   :  { %1870 = vmatpush2.msra.mxu1 %v1626_v38  ;;  %1800 = vmatprep.subr.mxu0 %v1363_v43  ;;  %v1557_v41 = vld [vmem:[#allocation7 + $0xb58] sm:$0xff]  ;;  %v1300_v38 = vld [vmem:[#allocation7 + $0x350] sm:$0xff] }
 0x3d5   :  { %1871 = vmatprep.subr.mxu1 %v1619_v44  ;;  %1801 = vmatpush2.msra.mxu0 %v1362_v45  ;;  %v1556_v43 = vld [vmem:[#allocation7 + $0xb50] sm:$0xff]  ;;  %v1293_v44 = vld [vmem:[#allocation7 + $0x318] sm:$0xff] }
 0x3d6   :  { %1872 = vmatpush2.msra.mxu1 %v1618_v46  ;;  %1802 = vmatprep.subr.mxu0 %v1355_v47  ;;  %v1549_v45 = vld [vmem:[#allocation7 + $0xb18] sm:$0xff]  ;;  %v1292_v46 = vld [vmem:[#allocation7 + $0x310] sm:$0xff] }
 0x3d7   :  { %1873 = vmatprep.subr.mxu1 %v1611_v48  ;;  %1803 = vmatpush2.msra.mxu0 %v1354_v49  ;;  %v1548_v47 = vld [vmem:[#allocation7 + $0xb10] sm:$0xff]  ;;  %v1285_v48 = vld [vmem:[#allocation7 + $0x2d8] sm:$0xff] }
 0x3d8   :  { %1874 = vmatpush2.msra.mxu1 %v1610_v50  ;;  %1804 = vmatprep.subr.mxu0 %v1347_v51  ;;  %v1541_v49 = vld [vmem:[#allocation7 + $0xad8] sm:$0xff]  ;;  %v1284_v50 = vld [vmem:[#allocation7 + $0x2d0] sm:$0xff] }
 0x3d9   :  { %1875 = vmatprep.subr.mxu1 %v1603_v52  ;;  %1805 = vmatpush2.msra.mxu0 %v1346_v53  ;;  %v1540_v51 = vld [vmem:[#allocation7 + $0xad0] sm:$0xff]  ;;  %v1277_v52 = vld [vmem:[#allocation7 + $0x298] sm:$0xff] }
 0x3da   :  { %1876 = vmatpush2.msra.mxu1 %v1602_v54  ;;  %1806 = vmatprep.subr.mxu0 %v1339_v55  ;;  %v1533_v53 = vld [vmem:[#allocation7 + $0xa98] sm:$0xff]  ;;  %v1276_v54 = vld [vmem:[#allocation7 + $0x290] sm:$0xff] }
 0x3db   :  { %1877 = vmatprep.subr.mxu1 %v1595_v56  ;;  %1807 = vmatpush2.msra.mxu0 %v1338_v57  ;;  %v1532_v55 = vld [vmem:[#allocation7 + $0xa90] sm:$0xff]  ;;  %v1269_v56 = vld [vmem:[#allocation7 + $0x258] sm:$0xff] }
 0x3dc   :  { %1878 = vmatpush2.msra.mxu1 %v1594_v58  ;;  %1808 = vmatprep.subr.mxu0 %v1331_v59  ;;  %v1525_v57 = vld [vmem:[#allocation7 + $0xa58] sm:$0xff]  ;;  %v1268_v58 = vld [vmem:[#allocation7 + $0x250] sm:$0xff] }
 0x3dd   :  { %1879 = vmatprep.subr.mxu1 %v1587_v60  ;;  %1809 = vmatpush2.msra.mxu0 %v1330_v61  ;;  %v1524_v59 = vld [vmem:[#allocation7 + $0xa50] sm:$0xff]  ;;  %v1261_v60 = vld [vmem:[#allocation7 + $0x218] sm:$0xff] }
 0x3de   :  { %1880 = vmatpush2.msra.mxu1 %v1586_v62  ;;  %1810 = vmatprep.subr.mxu0 %v1323_v63  ;;  %v1517_v61 = vld [vmem:[#allocation7 + $0xa18] sm:$0xff]  ;;  %v1260_v62 = vld [vmem:[#allocation7 + $0x210] sm:$0xff] }
 0x3df   :  { %1881 = vmatprep.subr.mxu1 %v1579_v1  ;;  %1811 = vmatpush2.msra.mxu0 %v1322_v2  ;;  %v1516_v63 = vld [vmem:[#allocation7 + $0xa10] sm:$0xff]  ;;  %v1253_v1 = vld [vmem:[#allocation7 + $0x1d8] sm:$0xff] }
 0x3e0   :  { %1882 = vmatpush2.msra.mxu1 %v1578_v3  ;;  %1890 = vmatprep.subr.mxu0 %v1317_v4  ;;  %v1509_v2 = vld [vmem:[#allocation7 + $0x9d8] sm:$0xff]  ;;  %v1252_v3 = vld [vmem:[#allocation7 + $0x1d0] sm:$0xff] }
 0x3e1   :  { %1961 = vmatprep.subr.mxu1 %v1573_v5  ;;  %v1508_v4 = vld [vmem:[#allocation7 + $0x9d0] sm:$0xff]  ;;  %v1245_v5 = vld [vmem:[#allocation7 + $0x198] sm:$0xff] }
 0x45b   :  { %v964_v6 = vpop.f32.mrf.mxu0 }
 0x45c   :  { %v1035_v7 = vpop.f32.mrf.mxu1  ;;  %v1182_v15 = vmul.f32 %v964_v6, %v4500_v28  ;;  %v1316_v28 = vld [vmem:[#allocation7 + $0x3d0] sm:$0xff]  ;;  %v1501_v6 = vld [vmem:[#allocation7 + $0x998] sm:$0xff] }
 0x45d   :  { %v966_v8 = vpop.f32.mrf.mxu0  ;;  %v1184_v17 = vmul.f32 %v1035_v7, %v4494_v23  ;;  %v1572_v23 = vld [vmem:[#allocation7 + $0xbd0] sm:$0xff] }
 0x45e   :  { %v1037_v13 = vpop.f32.mrf.mxu1  ;;  %v1183_v18 = vmul.f32 %v966_v8, %v4496_v26  ;;  %v1309_v26 = vld [vmem:[#allocation7 + $0x398] sm:$0xff]  ;;  %v1244_v7 = vld [vmem:[#allocation7 + $0x190] sm:$0xff] }
 0x45f   :  { %v1106_v16 = vpop.f32.mrf.mxu0  ;;  %v1185_v20 = vmul.f32 %v1037_v13, %v4498_v27  ;;  %v1565_v27 = vld [vmem:[#allocation7 + $0xb98] sm:$0xff]  ;;  %v1500_v8 = vld [vmem:[#allocation7 + $0x990] sm:$0xff] }
 0x460   :  { %v1177_v19 = vpop.f32.mrf.mxu1  ;;  %v1186_v21 = vadd.f32 %v1182_v15, %v1106_v16  ;;  %v1237_v13 = vld [vmem:[#allocation7 + $0x158] sm:$0xff]  ;;  %v1236_v16 = vld [vmem:[#allocation7 + $0x150] sm:$0xff] }
 0x461   :  { %v1108_v22 = vpop.f32.mrf.mxu0  ;;  %v1188_v24 = vadd.f32 %v1184_v17, %v1177_v19  ;;  %v1493_v15 = vld [vmem:[#allocation7 + $0x958] sm:$0xff]  ;;  %v1492_v17 = vld [vmem:[#allocation7 + $0x950] sm:$0xff] }
 0x462   :  { %v1187_v25 = vadd.f32 %v1183_v18, %v1108_v22  ;;  %v1179_v30 = vpop.f32.mrf.mxu1  ;;  %v4588_v33 = vmax.f32 %v1186_v21, 0.0  ;;  %v1229_v18 = vld [vmem:[#allocation7 + $0x118] sm:$0xff]  ;;  %v1484_v21 = vld [vmem:[#allocation7 + $0x910] sm:$0xff] }
 0x463   :  { %v1189_v31 = vadd.f32 %v1185_v20, %v1179_v30  ;;  %v4592_v36 = vmax.f32 %v1188_v24, 0.0  ;;  %v1485_v19 = vld [vmem:[#allocation7 + $0x918] sm:$0xff]  ;;  %v1228_v20 = vld [vmem:[#allocation7 + $0x110] sm:$0xff] }
 0x464   :  { %v4586_v32 = vmax.f32 %v1187_v25, 0.0  ;;  %v1221_v22 = vld [vmem:[#allocation7 + $0xd8] sm:$0xff]  ;;  %v1220_v25 = vld [vmem:[#allocation7 + $0xd0] sm:$0xff] }
 0x465   :  { %v4590_v35 = vmax.f32 %v1189_v31, 0.0  ;;  %v1477_v24 = vld [vmem:[#allocation7 + $0x8d8] sm:$0xff]  ;;  %v1476_v30 = vld [vmem:[#allocation7 + $0x8d0] sm:$0xff] }
 0x466   :  { %1812 = vmatprep.mubr.f32.mxu0 %v4586_v32  ;;  %v1213_v31 = vld [vmem:[#allocation7 + $0x98] sm:$0xff] }
 0x467   :  { %1883 = vmatprep.mubr.f32.mxu1 %v4590_v35  ;;  %1813 = vmatmul.mubr.f32.vlgmr.msra.gmra.mxu0 %v4588_v33 }
 0x468   :  { %1884 = vmatmul.mubr.f32.vlgmr.msra.gmra.mxu1 %v4592_v36  ;;  %1891 = vmatpush1.msra.mxu0 %v1316_v28  ;;  %v1469_v28 = vld [vmem:[#allocation7 + $0x898] sm:$0xff] }
 0x469   :  { %1962 = vmatpush1.msra.mxu1 %v1572_v23  ;;  %1892 = vmatprep.subr.mxu0 %v1309_v26  ;;  %v1212_v23 = vld [vmem:[#allocation7 + $0x90] sm:$0xff] }
 0x46a   :  { %1954 = vmatprep.mubr.f32.mxu0 %v4586_v32  ;;  %1963 = vmatprep.subr.mxu1 %v1565_v27  ;;  %v1468_v26 = vld [vmem:[#allocation7 + $0x890] sm:$0xff]  ;;  %v1205_v27 = vld [vmem:[#allocation7 + $0x58] sm:$0xff] }
 0x46b   :  { %2025 = vmatprep.mubr.f32.mxu1 %v4590_v35  ;;  %1893 = vmatpush1.msra.mxu0 %v1308_v40  ;;  %v1461_v40 = vld [vmem:[#allocation7 + $0x858] sm:$0xff] }
 0x46c   :  { %1964 = vmatpush1.msra.mxu1 %v1564_v42  ;;  %1894 = vmatprep.subr.mxu0 %v1301_v37  ;;  %v1204_v42 = vld [vmem:[#allocation7 + $0x50] sm:$0xff] }
 0x46d   :  { %1965 = vmatprep.subr.mxu1 %v1557_v41  ;;  %1895 = vmatpush1.msra.mxu0 %v1300_v38  ;;  %v1460_v37 = vld [vmem:[#allocation7 + $0x850] sm:$0xff]  ;;  %v1197_v41 = vld [vmem:[#allocation7 + $0x18] sm:$0xff] }
 0x46e   :  { %1966 = vmatpush1.msra.mxu1 %v1556_v43  ;;  %1896 = vmatprep.subr.mxu0 %v1293_v44  ;;  %v1453_v38 = vld [vmem:[#allocation7 + $0x818] sm:$0xff]  ;;  %v1196_v43 = vld [vmem:[#allocation7 + $0x10] sm:$0xff] }
 0x46f   :  { %1967 = vmatprep.subr.mxu1 %v1549_v45  ;;  %1897 = vmatpush1.msra.mxu0 %v1292_v46  ;;  %v1452_v44 = vld [vmem:[#allocation7 + $0x810] sm:$0xff]  ;;  %v1445_v45 = vld [vmem:[#allocation7 + $0x7d8] sm:$0xff] }
 0x470   :  { %1968 = vmatpush1.msra.mxu1 %v1548_v47  ;;  %1898 = vmatprep.subr.mxu0 %v1285_v48  ;;  %v1701_v46 = vld [vmem:[#allocation7 + $0xfd8] sm:$0xff]  ;;  %v1444_v47 = vld [vmem:[#allocation7 + $0x7d0] sm:$0xff] }
 0x471   :  { %1969 = vmatprep.subr.mxu1 %v1541_v49  ;;  %1899 = vmatpush1.msra.mxu0 %v1284_v50  ;;  %v1700_v48 = vld [vmem:[#allocation7 + $0xfd0] sm:$0xff]  ;;  %v1437_v49 = vld [vmem:[#allocation7 + $0x798] sm:$0xff] }
 0x472   :  { %1970 = vmatpush1.msra.mxu1 %v1540_v51  ;;  %1900 = vmatprep.subr.mxu0 %v1277_v52  ;;  %v1693_v50 = vld [vmem:[#allocation7 + $0xf98] sm:$0xff]  ;;  %v1436_v51 = vld [vmem:[#allocation7 + $0x790] sm:$0xff] }
 0x473   :  { %1971 = vmatprep.subr.mxu1 %v1533_v53  ;;  %1901 = vmatpush1.msra.mxu0 %v1276_v54  ;;  %v1692_v52 = vld [vmem:[#allocation7 + $0xf90] sm:$0xff]  ;;  %v1429_v53 = vld [vmem:[#allocation7 + $0x758] sm:$0xff] }
 0x474   :  { %1972 = vmatpush1.msra.mxu1 %v1532_v55  ;;  %1902 = vmatprep.subr.mxu0 %v1269_v56  ;;  %v1685_v54 = vld [vmem:[#allocation7 + $0xf58] sm:$0xff]  ;;  %v1428_v55 = vld [vmem:[#allocation7 + $0x750] sm:$0xff] }
 0x475   :  { %1973 = vmatprep.subr.mxu1 %v1525_v57  ;;  %1903 = vmatpush1.msra.mxu0 %v1268_v58  ;;  %v1684_v56 = vld [vmem:[#allocation7 + $0xf50] sm:$0xff]  ;;  %v1421_v57 = vld [vmem:[#allocation7 + $0x718] sm:$0xff] }
 0x476   :  { %1974 = vmatpush1.msra.mxu1 %v1524_v59  ;;  %1904 = vmatprep.subr.mxu0 %v1261_v60  ;;  %v1677_v58 = vld [vmem:[#allocation7 + $0xf18] sm:$0xff]  ;;  %v1420_v59 = vld [vmem:[#allocation7 + $0x710] sm:$0xff] }
 0x477   :  { %1975 = vmatprep.subr.mxu1 %v1517_v61  ;;  %1905 = vmatpush1.msra.mxu0 %v1260_v62  ;;  %v1676_v60 = vld [vmem:[#allocation7 + $0xf10] sm:$0xff]  ;;  %v1413_v61 = vld [vmem:[#allocation7 + $0x6d8] sm:$0xff] }
 0x478   :  { %1976 = vmatpush1.msra.mxu1 %v1516_v63  ;;  %1906 = vmatprep.subr.mxu0 %v1253_v1  ;;  %v1669_v62 = vld [vmem:[#allocation7 + $0xed8] sm:$0xff]  ;;  %v1412_v63 = vld [vmem:[#allocation7 + $0x6d0] sm:$0xff] }
 0x479   :  { %1977 = vmatprep.subr.mxu1 %v1509_v2  ;;  %1907 = vmatpush1.msra.mxu0 %v1252_v3  ;;  %v1668_v1 = vld [vmem:[#allocation7 + $0xed0] sm:$0xff]  ;;  %v1405_v2 = vld [vmem:[#allocation7 + $0x698] sm:$0xff] }
 0x47a   :  { %1978 = vmatpush1.msra.mxu1 %v1508_v4  ;;  %1908 = vmatprep.subr.mxu0 %v1245_v5  ;;  %v1661_v3 = vld [vmem:[#allocation7 + $0xe98] sm:$0xff]  ;;  %v1404_v4 = vld [vmem:[#allocation7 + $0x690] sm:$0xff] }
 0x47b   :  { %1979 = vmatprep.subr.mxu1 %v1501_v6  ;;  %1909 = vmatpush1.msra.mxu0 %v1244_v7  ;;  %v1660_v5 = vld [vmem:[#allocation7 + $0xe90] sm:$0xff]  ;;  %v1397_v6 = vld [vmem:[#allocation7 + $0x658] sm:$0xff] }
 0x47c   :  { %1980 = vmatpush1.msra.mxu1 %v1500_v8  ;;  %1910 = vmatprep.subr.mxu0 %v1237_v13  ;;  %v1653_v7 = vld [vmem:[#allocation7 + $0xe58] sm:$0xff]  ;;  %v1396_v8 = vld [vmem:[#allocation7 + $0x650] sm:$0xff] }
 0x47d   :  { %1981 = vmatprep.subr.mxu1 %v1493_v15  ;;  %1911 = vmatpush1.msra.mxu0 %v1236_v16  ;;  %v1652_v13 = vld [vmem:[#allocation7 + $0xe50] sm:$0xff]  ;;  %v1389_v15 = vld [vmem:[#allocation7 + $0x618] sm:$0xff] }
 0x47e   :  { %1982 = vmatpush1.msra.mxu1 %v1492_v17  ;;  %1912 = vmatprep.subr.mxu0 %v1229_v18  ;;  %v1645_v16 = vld [vmem:[#allocation7 + $0xe18] sm:$0xff]  ;;  %v1388_v17 = vld [vmem:[#allocation7 + $0x610] sm:$0xff] }
 0x47f   :  { %1983 = vmatprep.subr.mxu1 %v1485_v19  ;;  %1913 = vmatpush1.msra.mxu0 %v1228_v20  ;;  %v1644_v18 = vld [vmem:[#allocation7 + $0xe10] sm:$0xff]  ;;  %v1381_v19 = vld [vmem:[#allocation7 + $0x5d8] sm:$0xff] }
 0x480   :  { %1984 = vmatpush1.msra.mxu1 %v1484_v21  ;;  %1914 = vmatprep.subr.mxu0 %v1221_v22  ;;  %v1637_v20 = vld [vmem:[#allocation7 + $0xdd8] sm:$0xff]  ;;  %v1380_v21 = vld [vmem:[#allocation7 + $0x5d0] sm:$0xff] }
 0x481   :  { %1985 = vmatprep.subr.mxu1 %v1477_v24  ;;  %1915 = vmatpush1.msra.mxu0 %v1220_v25  ;;  %v1636_v22 = vld [vmem:[#allocation7 + $0xdd0] sm:$0xff]  ;;  %v1373_v24 = vld [vmem:[#allocation7 + $0x598] sm:$0xff] }
 0x482   :  { %1986 = vmatpush1.msra.mxu1 %v1476_v30  ;;  %1916 = vmatprep.subr.mxu0 %v1213_v31  ;;  %v1629_v25 = vld [vmem:[#allocation7 + $0xd98] sm:$0xff]  ;;  %v1372_v30 = vld [vmem:[#allocation7 + $0x590] sm:$0xff] }
 0x483   :  { %1987 = vmatprep.subr.mxu1 %v1469_v28  ;;  %1917 = vmatpush1.msra.mxu0 %v1212_v23  ;;  %v1628_v31 = vld [vmem:[#allocation7 + $0xd90] sm:$0xff]  ;;  %v1365_v28 = vld [vmem:[#allocation7 + $0x558] sm:$0xff] }
 0x484   :  { %1988 = vmatpush1.msra.mxu1 %v1468_v26  ;;  %1918 = vmatprep.subr.mxu0 %v1205_v27  ;;  %v1621_v23 = vld [vmem:[#allocation7 + $0xd58] sm:$0xff]  ;;  %v1364_v26 = vld [vmem:[#allocation7 + $0x550] sm:$0xff] }
 0x485   :  { %1989 = vmatprep.subr.mxu1 %v1461_v40  ;;  %1919 = vmatpush1.msra.mxu0 %v1204_v42  ;;  %v1620_v27 = vld [vmem:[#allocation7 + $0xd50] sm:$0xff]  ;;  %v1357_v40 = vld [vmem:[#allocation7 + $0x518] sm:$0xff] }
 0x486   :  { %1990 = vmatpush1.msra.mxu1 %v1460_v37  ;;  %1920 = vmatprep.subr.mxu0 %v1197_v41  ;;  %v1613_v42 = vld [vmem:[#allocation7 + $0xd18] sm:$0xff]  ;;  %v1356_v37 = vld [vmem:[#allocation7 + $0x510] sm:$0xff] }
 0x487   :  { %1991 = vmatprep.subr.mxu1 %v1453_v38  ;;  %1921 = vmatpush1.msra.mxu0 %v1196_v43  ;;  %v1612_v41 = vld [vmem:[#allocation7 + $0xd10] sm:$0xff]  ;;  %v1349_v38 = vld [vmem:[#allocation7 + $0x4d8] sm:$0xff] }
 0x488   :  { %1992 = vmatpush1.msra.mxu1 %v1452_v44  ;;  %1922 = vmatprep.subr.mxu0 %v1445_v45  ;;  %v1605_v43 = vld [vmem:[#allocation7 + $0xcd8] sm:$0xff]  ;;  %v1348_v44 = vld [vmem:[#allocation7 + $0x4d0] sm:$0xff] }
 0x489   :  { %1993 = vmatprep.subr.mxu1 %v1701_v46  ;;  %1923 = vmatpush2.msra.mxu0 %v1444_v47  ;;  %v1604_v45 = vld [vmem:[#allocation7 + $0xcd0] sm:$0xff]  ;;  %v1341_v46 = vld [vmem:[#allocation7 + $0x498] sm:$0xff] }
 0x48a   :  { %1994 = vmatpush2.msra.mxu1 %v1700_v48  ;;  %1924 = vmatprep.subr.mxu0 %v1437_v49  ;;  %v1597_v47 = vld [vmem:[#allocation7 + $0xc98] sm:$0xff]  ;;  %v1340_v48 = vld [vmem:[#allocation7 + $0x490] sm:$0xff] }
 0x48b   :  { %1995 = vmatprep.subr.mxu1 %v1693_v50  ;;  %1925 = vmatpush2.msra.mxu0 %v1436_v51  ;;  %v1596_v49 = vld [vmem:[#allocation7 + $0xc90] sm:$0xff]  ;;  %v1333_v50 = vld [vmem:[#allocation7 + $0x458] sm:$0xff] }
 0x48c   :  { %1996 = vmatpush2.msra.mxu1 %v1692_v52  ;;  %1926 = vmatprep.subr.mxu0 %v1429_v53  ;;  %v1589_v51 = vld [vmem:[#allocation7 + $0xc58] sm:$0xff]  ;;  %v1332_v52 = vld [vmem:[#allocation7 + $0x450] sm:$0xff] }
 0x48d   :  { %1997 = vmatprep.subr.mxu1 %v1685_v54  ;;  %1927 = vmatpush2.msra.mxu0 %v1428_v55  ;;  %v1588_v53 = vld [vmem:[#allocation7 + $0xc50] sm:$0xff]  ;;  %v1325_v54 = vld [vmem:[#allocation7 + $0x418] sm:$0xff] }
 0x48e   :  { %1998 = vmatpush2.msra.mxu1 %v1684_v56  ;;  %1928 = vmatprep.subr.mxu0 %v1421_v57  ;;  %v1581_v55 = vld [vmem:[#allocation7 + $0xc18] sm:$0xff]  ;;  %v1324_v56 = vld [vmem:[#allocation7 + $0x410] sm:$0xff] }
 0x48f   :  { %1999 = vmatprep.subr.mxu1 %v1677_v58  ;;  %1929 = vmatpush2.msra.mxu0 %v1420_v59  ;;  %v1580_v57 = vld [vmem:[#allocation7 + $0xc10] sm:$0xff]  ;;  %v1319_v58 = vld [vmem:[#allocation7 + $0x3e8] sm:$0xff] }
 0x490   :  { %2000 = vmatpush2.msra.mxu1 %v1676_v60  ;;  %1930 = vmatprep.subr.mxu0 %v1413_v61  ;;  %v1575_v59 = vld [vmem:[#allocation7 + $0xbe8] sm:$0xff]  ;;  %v1318_v60 = vld [vmem:[#allocation7 + $0x3e0] sm:$0xff] }
 0x491   :  { %2001 = vmatprep.subr.mxu1 %v1669_v62  ;;  %1931 = vmatpush2.msra.mxu0 %v1412_v63  ;;  %v1574_v61 = vld [vmem:[#allocation7 + $0xbe0] sm:$0xff]  ;;  %v1311_v62 = vld [vmem:[#allocation7 + $0x3a8] sm:$0xff] }
 0x492   :  { %2002 = vmatpush2.msra.mxu1 %v1668_v1  ;;  %1932 = vmatprep.subr.mxu0 %v1405_v2  ;;  %v1567_v63 = vld [vmem:[#allocation7 + $0xba8] sm:$0xff]  ;;  %v1310_v1 = vld [vmem:[#allocation7 + $0x3a0] sm:$0xff] }
 0x493   :  { %2003 = vmatprep.subr.mxu1 %v1661_v3  ;;  %1933 = vmatpush2.msra.mxu0 %v1404_v4  ;;  %v1566_v2 = vld [vmem:[#allocation7 + $0xba0] sm:$0xff]  ;;  %v1303_v3 = vld [vmem:[#allocation7 + $0x368] sm:$0xff] }
 0x494   :  { %2004 = vmatpush2.msra.mxu1 %v1660_v5  ;;  %1934 = vmatprep.subr.mxu0 %v1397_v6  ;;  %v1559_v4 = vld [vmem:[#allocation7 + $0xb68] sm:$0xff]  ;;  %v1302_v5 = vld [vmem:[#allocation7 + $0x360] sm:$0xff] }
 0x495   :  { %2005 = vmatprep.subr.mxu1 %v1653_v7  ;;  %1935 = vmatpush2.msra.mxu0 %v1396_v8  ;;  %v1558_v6 = vld [vmem:[#allocation7 + $0xb60] sm:$0xff]  ;;  %v1295_v7 = vld [vmem:[#allocation7 + $0x328] sm:$0xff] }
 0x496   :  { %2006 = vmatpush2.msra.mxu1 %v1652_v13  ;;  %1936 = vmatprep.subr.mxu0 %v1389_v15  ;;  %v1551_v8 = vld [vmem:[#allocation7 + $0xb28] sm:$0xff]  ;;  %v1294_v13 = vld [vmem:[#allocation7 + $0x320] sm:$0xff] }
 0x497   :  { %2007 = vmatprep.subr.mxu1 %v1645_v16  ;;  %1937 = vmatpush2.msra.mxu0 %v1388_v17  ;;  %v1550_v15 = vld [vmem:[#allocation7 + $0xb20] sm:$0xff]  ;;  %v1287_v16 = vld [vmem:[#allocation7 + $0x2e8] sm:$0xff] }
 0x498   :  { %2008 = vmatpush2.msra.mxu1 %v1644_v18  ;;  %1938 = vmatprep.subr.mxu0 %v1381_v19  ;;  %v1543_v17 = vld [vmem:[#allocation7 + $0xae8] sm:$0xff]  ;;  %v1286_v18 = vld [vmem:[#allocation7 + $0x2e0] sm:$0xff] }
 0x499   :  { %2009 = vmatprep.subr.mxu1 %v1637_v20  ;;  %1939 = vmatpush2.msra.mxu0 %v1380_v21  ;;  %v1542_v19 = vld [vmem:[#allocation7 + $0xae0] sm:$0xff]  ;;  %v1279_v20 = vld [vmem:[#allocation7 + $0x2a8] sm:$0xff] }
 0x49a   :  { %2010 = vmatpush2.msra.mxu1 %v1636_v22  ;;  %1940 = vmatprep.subr.mxu0 %v1373_v24  ;;  %v1535_v21 = vld [vmem:[#allocation7 + $0xaa8] sm:$0xff]  ;;  %v1278_v22 = vld [vmem:[#allocation7 + $0x2a0] sm:$0xff] }
 0x49b   :  { %2011 = vmatprep.subr.mxu1 %v1629_v25  ;;  %1941 = vmatpush2.msra.mxu0 %v1372_v30  ;;  %v1534_v24 = vld [vmem:[#allocation7 + $0xaa0] sm:$0xff]  ;;  %v1271_v25 = vld [vmem:[#allocation7 + $0x268] sm:$0xff] }
 0x49c   :  { %2012 = vmatpush2.msra.mxu1 %v1628_v31  ;;  %1942 = vmatprep.subr.mxu0 %v1365_v28  ;;  %v1527_v30 = vld [vmem:[#allocation7 + $0xa68] sm:$0xff]  ;;  %v1270_v31 = vld [vmem:[#allocation7 + $0x260] sm:$0xff] }
 0x49d   :  { %2013 = vmatprep.subr.mxu1 %v1621_v23  ;;  %1943 = vmatpush2.msra.mxu0 %v1364_v26  ;;  %v1526_v28 = vld [vmem:[#allocation7 + $0xa60] sm:$0xff]  ;;  %v1263_v23 = vld [vmem:[#allocation7 + $0x228] sm:$0xff] }
 0x49e   :  { %2014 = vmatpush2.msra.mxu1 %v1620_v27  ;;  %1944 = vmatprep.subr.mxu0 %v1357_v40  ;;  %v1519_v26 = vld [vmem:[#allocation7 + $0xa28] sm:$0xff]  ;;  %v1262_v27 = vld [vmem:[#allocation7 + $0x220] sm:$0xff] }
 0x49f   :  { %2015 = vmatprep.subr.mxu1 %v1613_v42  ;;  %1945 = vmatpush2.msra.mxu0 %v1356_v37  ;;  %v1518_v40 = vld [vmem:[#allocation7 + $0xa20] sm:$0xff]  ;;  %v1255_v42 = vld [vmem:[#allocation7 + $0x1e8] sm:$0xff] }
 0x4a0   :  { %2016 = vmatpush2.msra.mxu1 %v1612_v41  ;;  %1946 = vmatprep.subr.mxu0 %v1349_v38  ;;  %v1511_v37 = vld [vmem:[#allocation7 + $0x9e8] sm:$0xff]  ;;  %v1254_v41 = vld [vmem:[#allocation7 + $0x1e0] sm:$0xff] }
 0x4a1   :  { %2017 = vmatprep.subr.mxu1 %v1605_v43  ;;  %1947 = vmatpush2.msra.mxu0 %v1348_v44  ;;  %v1510_v38 = vld [vmem:[#allocation7 + $0x9e0] sm:$0xff]  ;;  %v1247_v43 = vld [vmem:[#allocation7 + $0x1a8] sm:$0xff] }
 0x4a2   :  { %2018 = vmatpush2.msra.mxu1 %v1604_v45  ;;  %1948 = vmatprep.subr.mxu0 %v1341_v46  ;;  %v1503_v44 = vld [vmem:[#allocation7 + $0x9a8] sm:$0xff]  ;;  %v1246_v45 = vld [vmem:[#allocation7 + $0x1a0] sm:$0xff] }
 0x4a3   :  { %2019 = vmatprep.subr.mxu1 %v1597_v47  ;;  %1949 = vmatpush2.msra.mxu0 %v1340_v48  ;;  %v1502_v46 = vld [vmem:[#allocation7 + $0x9a0] sm:$0xff]  ;;  %v1239_v47 = vld [vmem:[#allocation7 + $0x168] sm:$0xff] }
 0x4a4   :  { %2020 = vmatpush2.msra.mxu1 %v1596_v49  ;;  %1950 = vmatprep.subr.mxu0 %v1333_v50  ;;  %v1495_v48 = vld [vmem:[#allocation7 + $0x968] sm:$0xff]  ;;  %v1238_v49 = vld [vmem:[#allocation7 + $0x160] sm:$0xff] }
 0x4a5   :  { %2021 = vmatprep.subr.mxu1 %v1589_v51  ;;  %1951 = vmatpush2.msra.mxu0 %v1332_v52  ;;  %v1494_v50 = vld [vmem:[#allocation7 + $0x960] sm:$0xff]  ;;  %v1231_v51 = vld [vmem:[#allocation7 + $0x128] sm:$0xff] }
 0x4a6   :  { %2022 = vmatpush2.msra.mxu1 %v1588_v53  ;;  %1952 = vmatprep.subr.mxu0 %v1325_v54  ;;  %v1487_v52 = vld [vmem:[#allocation7 + $0x928] sm:$0xff]  ;;  %v1230_v53 = vld [vmem:[#allocation7 + $0x120] sm:$0xff] }
 0x4a7   :  { %2023 = vmatprep.subr.mxu1 %v1581_v55  ;;  %1953 = vmatpush2.msra.mxu0 %v1324_v56  ;;  %v1486_v54 = vld [vmem:[#allocation7 + $0x920] sm:$0xff]  ;;  %v1223_v55 = vld [vmem:[#allocation7 + $0xe8] sm:$0xff] }
 0x4a8   :  { %2024 = vmatpush2.msra.mxu1 %v1580_v57  ;;  %1955 = vmatmul.mubr.f32.vlgmr.msra.gmra.mxu0 %v4588_v33  ;;  %v1479_v56 = vld [vmem:[#allocation7 + $0x8e8] sm:$0xff]  ;;  %v1222_v57 = vld [vmem:[#allocation7 + $0xe0] sm:$0xff] }
 0x4a9   :  { %2026 = vmatmul.mubr.f32.vlgmr.msra.gmra.mxu1 %v4592_v36  ;;  %2032 = vmatprep.subr.mxu0 %v1319_v58  ;;  %v1478_v58 = vld [vmem:[#allocation7 + $0x8e0] sm:$0xff] }
 0x4aa   :  { %2103 = vmatprep.subr.mxu1 %v1575_v59  ;;  %2033 = vmatpush1.msra.mxu0 %v1318_v60  ;;  %v1215_v59 = vld [vmem:[#allocation7 + $0xa8] sm:$0xff] }
 0x4ab   :  { %2096 = vmatprep.mubr.f32.mxu0 %v4586_v32  ;;  %2104 = vmatpush1.msra.mxu1 %v1574_v61  ;;  %v1471_v60 = vld [vmem:[#allocation7 + $0x8a8] sm:$0xff]  ;;  %v1214_v61 = vld [vmem:[#allocation7 + $0xa0] sm:$0xff] }
 0x4ac   :  { %2167 = vmatprep.mubr.f32.mxu1 %v4590_v35  ;;  %2034 = vmatprep.subr.mxu0 %v1311_v62  ;;  %v1470_v62 = vld [vmem:[#allocation7 + $0x8a0] sm:$0xff] }
 0x4ad   :  { %2105 = vmatprep.subr.mxu1 %v1567_v63  ;;  %2035 = vmatpush1.msra.mxu0 %v1310_v1  ;;  %v1207_v63 = vld [vmem:[#allocation7 + $0x68] sm:$0xff] }
 0x4ae   :  { %2106 = vmatpush1.msra.mxu1 %v1566_v2  ;;  %2036 = vmatprep.subr.mxu0 %v1303_v3  ;;  %v1463_v1 = vld [vmem:[#allocation7 + $0x868] sm:$0xff]  ;;  %v1206_v2 = vld [vmem:[#allocation7 + $0x60] sm:$0xff] }
 0x4af   :  { %2107 = vmatprep.subr.mxu1 %v1559_v4  ;;  %2037 = vmatpush1.msra.mxu0 %v1302_v5  ;;  %v1462_v3 = vld [vmem:[#allocation7 + $0x860] sm:$0xff]  ;;  %v1199_v4 = vld [vmem:[#allocation7 + $0x28] sm:$0xff] }
 0x4b0   :  { %2108 = vmatpush1.msra.mxu1 %v1558_v6  ;;  %2038 = vmatprep.subr.mxu0 %v1295_v7  ;;  %v1455_v5 = vld [vmem:[#allocation7 + $0x828] sm:$0xff]  ;;  %v1198_v6 = vld [vmem:[#allocation7 + $0x20] sm:$0xff] }
 0x4b1   :  { %2109 = vmatprep.subr.mxu1 %v1551_v8  ;;  %2039 = vmatpush1.msra.mxu0 %v1294_v13  ;;  %v1454_v7 = vld [vmem:[#allocation7 + $0x820] sm:$0xff]  ;;  %v1447_v8 = vld [vmem:[#allocation7 + $0x7e8] sm:$0xff] }
 0x4b2   :  { %2110 = vmatpush1.msra.mxu1 %v1550_v15  ;;  %2040 = vmatprep.subr.mxu0 %v1287_v16  ;;  %v1703_v13 = vld [vmem:[#allocation7 + $0xfe8] sm:$0xff]  ;;  %v1446_v15 = vld [vmem:[#allocation7 + $0x7e0] sm:$0xff] }
 0x4b3   :  { %2111 = vmatprep.subr.mxu1 %v1543_v17  ;;  %2041 = vmatpush1.msra.mxu0 %v1286_v18  ;;  %v1702_v16 = vld [vmem:[#allocation7 + $0xfe0] sm:$0xff]  ;;  %v1439_v17 = vld [vmem:[#allocation7 + $0x7a8] sm:$0xff] }
 0x4b4   :  { %2112 = vmatpush1.msra.mxu1 %v1542_v19  ;;  %2042 = vmatprep.subr.mxu0 %v1279_v20  ;;  %v1695_v18 = vld [vmem:[#allocation7 + $0xfa8] sm:$0xff]  ;;  %v1438_v19 = vld [vmem:[#allocation7 + $0x7a0] sm:$0xff] }
 0x4b5   :  { %2113 = vmatprep.subr.mxu1 %v1535_v21  ;;  %2043 = vmatpush1.msra.mxu0 %v1278_v22  ;;  %v1694_v20 = vld [vmem:[#allocation7 + $0xfa0] sm:$0xff]  ;;  %v1431_v21 = vld [vmem:[#allocation7 + $0x768] sm:$0xff] }
 0x4b6   :  { %2114 = vmatpush1.msra.mxu1 %v1534_v24  ;;  %2044 = vmatprep.subr.mxu0 %v1271_v25  ;;  %v1687_v22 = vld [vmem:[#allocation7 + $0xf68] sm:$0xff]  ;;  %v1430_v24 = vld [vmem:[#allocation7 + $0x760] sm:$0xff] }
 0x4b7   :  { %2115 = vmatprep.subr.mxu1 %v1527_v30  ;;  %2045 = vmatpush1.msra.mxu0 %v1270_v31  ;;  %v1686_v25 = vld [vmem:[#allocation7 + $0xf60] sm:$0xff]  ;;  %v1423_v30 = vld [vmem:[#allocation7 + $0x728] sm:$0xff] }
 0x4b8   :  { %2116 = vmatpush1.msra.mxu1 %v1526_v28  ;;  %2046 = vmatprep.subr.mxu0 %v1263_v23  ;;  %v1679_v31 = vld [vmem:[#allocation7 + $0xf28] sm:$0xff]  ;;  %v1422_v28 = vld [vmem:[#allocation7 + $0x720] sm:$0xff] }
 0x4b9   :  { %2117 = vmatprep.subr.mxu1 %v1519_v26  ;;  %2047 = vmatpush1.msra.mxu0 %v1262_v27  ;;  %v1678_v23 = vld [vmem:[#allocation7 + $0xf20] sm:$0xff]  ;;  %v1415_v26 = vld [vmem:[#allocation7 + $0x6e8] sm:$0xff] }
 0x4ba   :  { %2118 = vmatpush1.msra.mxu1 %v1518_v40  ;;  %2048 = vmatprep.subr.mxu0 %v1255_v42  ;;  %v1671_v27 = vld [vmem:[#allocation7 + $0xee8] sm:$0xff]  ;;  %v1414_v40 = vld [vmem:[#allocation7 + $0x6e0] sm:$0xff] }
 0x4bb   :  { %2119 = vmatprep.subr.mxu1 %v1511_v37  ;;  %2049 = vmatpush1.msra.mxu0 %v1254_v41  ;;  %v1670_v42 = vld [vmem:[#allocation7 + $0xee0] sm:$0xff]  ;;  %v1407_v37 = vld [vmem:[#allocation7 + $0x6a8] sm:$0xff] }
 0x4bc   :  { %2120 = vmatpush1.msra.mxu1 %v1510_v38  ;;  %2050 = vmatprep.subr.mxu0 %v1247_v43  ;;  %v1663_v41 = vld [vmem:[#allocation7 + $0xea8] sm:$0xff]  ;;  %v1406_v38 = vld [vmem:[#allocation7 + $0x6a0] sm:$0xff] }
 0x4bd   :  { %2121 = vmatprep.subr.mxu1 %v1503_v44  ;;  %2051 = vmatpush1.msra.mxu0 %v1246_v45  ;;  %v1662_v43 = vld [vmem:[#allocation7 + $0xea0] sm:$0xff]  ;;  %v1399_v44 = vld [vmem:[#allocation7 + $0x668] sm:$0xff] }
 0x4be   :  { %2122 = vmatpush1.msra.mxu1 %v1502_v46  ;;  %2052 = vmatprep.subr.mxu0 %v1239_v47  ;;  %v1655_v45 = vld [vmem:[#allocation7 + $0xe68] sm:$0xff]  ;;  %v1398_v46 = vld [vmem:[#allocation7 + $0x660] sm:$0xff] }
 0x4bf   :  { %2123 = vmatprep.subr.mxu1 %v1495_v48  ;;  %2053 = vmatpush1.msra.mxu0 %v1238_v49  ;;  %v1654_v47 = vld [vmem:[#allocation7 + $0xe60] sm:$0xff]  ;;  %v1391_v48 = vld [vmem:[#allocation7 + $0x628] sm:$0xff] }
 0x4c0   :  { %2124 = vmatpush1.msra.mxu1 %v1494_v50  ;;  %2054 = vmatprep.subr.mxu0 %v1231_v51  ;;  %v1647_v49 = vld [vmem:[#allocation7 + $0xe28] sm:$0xff]  ;;  %v1390_v50 = vld [vmem:[#allocation7 + $0x620] sm:$0xff] }
 0x4c1   :  { %2125 = vmatprep.subr.mxu1 %v1487_v52  ;;  %2055 = vmatpush1.msra.mxu0 %v1230_v53  ;;  %v1646_v51 = vld [vmem:[#allocation7 + $0xe20] sm:$0xff]  ;;  %v1383_v52 = vld [vmem:[#allocation7 + $0x5e8] sm:$0xff] }
 0x4c2   :  { %2126 = vmatpush1.msra.mxu1 %v1486_v54  ;;  %2056 = vmatprep.subr.mxu0 %v1223_v55  ;;  %v1639_v53 = vld [vmem:[#allocation7 + $0xde8] sm:$0xff]  ;;  %v1382_v54 = vld [vmem:[#allocation7 + $0x5e0] sm:$0xff] }
 0x4c3   :  { %2127 = vmatprep.subr.mxu1 %v1479_v56  ;;  %2057 = vmatpush1.msra.mxu0 %v1222_v57  ;;  %v1638_v55 = vld [vmem:[#allocation7 + $0xde0] sm:$0xff]  ;;  %v1375_v56 = vld [vmem:[#allocation7 + $0x5a8] sm:$0xff] }
 0x4c4   :  { %2128 = vmatpush1.msra.mxu1 %v1478_v58  ;;  %2058 = vmatprep.subr.mxu0 %v1215_v59  ;;  %v1631_v57 = vld [vmem:[#allocation7 + $0xda8] sm:$0xff]  ;;  %v1374_v58 = vld [vmem:[#allocation7 + $0x5a0] sm:$0xff] }
 0x4c5   :  { %2129 = vmatprep.subr.mxu1 %v1471_v60  ;;  %2059 = vmatpush1.msra.mxu0 %v1214_v61  ;;  %v1630_v59 = vld [vmem:[#allocation7 + $0xda0] sm:$0xff]  ;;  %v1367_v60 = vld [vmem:[#allocation7 + $0x568] sm:$0xff] }
 0x4c6   :  { %2130 = vmatpush1.msra.mxu1 %v1470_v62  ;;  %2060 = vmatprep.subr.mxu0 %v1207_v63  ;;  %v1623_v61 = vld [vmem:[#allocation7 + $0xd68] sm:$0xff]  ;;  %v1366_v62 = vld [vmem:[#allocation7 + $0x560] sm:$0xff] }
 0x4c7   :  { %2131 = vmatprep.subr.mxu1 %v1463_v1  ;;  %2061 = vmatpush1.msra.mxu0 %v1206_v2  ;;  %v1622_v63 = vld [vmem:[#allocation7 + $0xd60] sm:$0xff]  ;;  %v1359_v1 = vld [vmem:[#allocation7 + $0x528] sm:$0xff] }
 0x4c8   :  { %2132 = vmatpush1.msra.mxu1 %v1462_v3  ;;  %2062 = vmatprep.subr.mxu0 %v1199_v4  ;;  %v1615_v2 = vld [vmem:[#allocation7 + $0xd28] sm:$0xff]  ;;  %v1358_v3 = vld [vmem:[#allocation7 + $0x520] sm:$0xff] }
 0x4c9   :  { %2133 = vmatprep.subr.mxu1 %v1455_v5  ;;  %2063 = vmatpush1.msra.mxu0 %v1198_v6  ;;  %v1614_v4 = vld [vmem:[#allocation7 + $0xd20] sm:$0xff]  ;;  %v1351_v5 = vld [vmem:[#allocation7 + $0x4e8] sm:$0xff] }
 0x4ca   :  { %2134 = vmatpush1.msra.mxu1 %v1454_v7  ;;  %2064 = vmatprep.subr.mxu0 %v1447_v8  ;;  %v1607_v6 = vld [vmem:[#allocation7 + $0xce8] sm:$0xff]  ;;  %v1350_v7 = vld [vmem:[#allocation7 + $0x4e0] sm:$0xff] }
 0x4cb   :  { %2135 = vmatprep.subr.mxu1 %v1703_v13  ;;  %2065 = vmatpush2.msra.mxu0 %v1446_v15  ;;  %v1606_v8 = vld [vmem:[#allocation7 + $0xce0] sm:$0xff]  ;;  %v1343_v13 = vld [vmem:[#allocation7 + $0x4a8] sm:$0xff] }
 0x4cc   :  { %2136 = vmatpush2.msra.mxu1 %v1702_v16  ;;  %2066 = vmatprep.subr.mxu0 %v1439_v17  ;;  %v1599_v15 = vld [vmem:[#allocation7 + $0xca8] sm:$0xff]  ;;  %v1342_v16 = vld [vmem:[#allocation7 + $0x4a0] sm:$0xff] }
 0x4cd   :  { %2137 = vmatprep.subr.mxu1 %v1695_v18  ;;  %2067 = vmatpush2.msra.mxu0 %v1438_v19  ;;  %v1598_v17 = vld [vmem:[#allocation7 + $0xca0] sm:$0xff]  ;;  %v1335_v18 = vld [vmem:[#allocation7 + $0x468] sm:$0xff] }
 0x4ce   :  { %2138 = vmatpush2.msra.mxu1 %v1694_v20  ;;  %2068 = vmatprep.subr.mxu0 %v1431_v21  ;;  %v1591_v19 = vld [vmem:[#allocation7 + $0xc68] sm:$0xff]  ;;  %v1334_v20 = vld [vmem:[#allocation7 + $0x460] sm:$0xff] }
 0x4cf   :  { %2139 = vmatprep.subr.mxu1 %v1687_v22  ;;  %2069 = vmatpush2.msra.mxu0 %v1430_v24  ;;  %v1590_v21 = vld [vmem:[#allocation7 + $0xc60] sm:$0xff]  ;;  %v1327_v22 = vld [vmem:[#allocation7 + $0x428] sm:$0xff] }
 0x4d0   :  { %2140 = vmatpush2.msra.mxu1 %v1686_v25  ;;  %2070 = vmatprep.subr.mxu0 %v1423_v30  ;;  %v1583_v24 = vld [vmem:[#allocation7 + $0xc28] sm:$0xff]  ;;  %v1326_v25 = vld [vmem:[#allocation7 + $0x420] sm:$0xff] }
 0x4d1   :  { %2141 = vmatprep.subr.mxu1 %v1679_v31  ;;  %2071 = vmatpush2.msra.mxu0 %v1422_v28  ;;  %v1582_v30 = vld [vmem:[#allocation7 + $0xc20] sm:$0xff]  ;;  %v1321_v31 = vld [vmem:[#allocation7 + $0x3f8] sm:$0xff] }
 0x4d2   :  { %2142 = vmatpush2.msra.mxu1 %v1678_v23  ;;  %2072 = vmatprep.subr.mxu0 %v1415_v26  ;;  %v1577_v28 = vld [vmem:[#allocation7 + $0xbf8] sm:$0xff]  ;;  %v1320_v23 = vld [vmem:[#allocation7 + $0x3f0] sm:$0xff] }
 0x4d3   :  { %2143 = vmatprep.subr.mxu1 %v1671_v27  ;;  %2073 = vmatpush2.msra.mxu0 %v1414_v40  ;;  %v1576_v26 = vld [vmem:[#allocation7 + $0xbf0] sm:$0xff]  ;;  %v1313_v27 = vld [vmem:[#allocation7 + $0x3b8] sm:$0xff] }
 0x4d4   :  { %2144 = vmatpush2.msra.mxu1 %v1670_v42  ;;  %2074 = vmatprep.subr.mxu0 %v1407_v37  ;;  %v1569_v40 = vld [vmem:[#allocation7 + $0xbb8] sm:$0xff]  ;;  %v1312_v42 = vld [vmem:[#allocation7 + $0x3b0] sm:$0xff] }
 0x4d5   :  { %2145 = vmatprep.subr.mxu1 %v1663_v41  ;;  %2075 = vmatpush2.msra.mxu0 %v1406_v38  ;;  %v1568_v37 = vld [vmem:[#allocation7 + $0xbb0] sm:$0xff]  ;;  %v1305_v41 = vld [vmem:[#allocation7 + $0x378] sm:$0xff] }
 0x4d6   :  { %2146 = vmatpush2.msra.mxu1 %v1662_v43  ;;  %2076 = vmatprep.subr.mxu0 %v1399_v44  ;;  %v1561_v38 = vld [vmem:[#allocation7 + $0xb78] sm:$0xff]  ;;  %v1304_v43 = vld [vmem:[#allocation7 + $0x370] sm:$0xff] }
 0x4d7   :  { %2147 = vmatprep.subr.mxu1 %v1655_v45  ;;  %2077 = vmatpush2.msra.mxu0 %v1398_v46  ;;  %v1560_v44 = vld [vmem:[#allocation7 + $0xb70] sm:$0xff]  ;;  %v1297_v45 = vld [vmem:[#allocation7 + $0x338] sm:$0xff] }
 0x4d8   :  { %2148 = vmatpush2.msra.mxu1 %v1654_v47  ;;  %2078 = vmatprep.subr.mxu0 %v1391_v48  ;;  %v1553_v46 = vld [vmem:[#allocation7 + $0xb38] sm:$0xff]  ;;  %v1296_v47 = vld [vmem:[#allocation7 + $0x330] sm:$0xff] }
 0x4d9   :  { %2149 = vmatprep.subr.mxu1 %v1647_v49  ;;  %2079 = vmatpush2.msra.mxu0 %v1390_v50  ;;  %v1552_v48 = vld [vmem:[#allocation7 + $0xb30] sm:$0xff]  ;;  %v1545_v49 = vld [vmem:[#allocation7 + $0xaf8] sm:$0xff] }
 0x4da   :  { %2150 = vmatpush2.msra.mxu1 %v1646_v51  ;;  %2080 = vmatprep.subr.mxu0 %v1383_v52  ;;  %v1288_v50 = vld [vmem:[#allocation7 + $0x2f0] sm:$0xff]  ;;  %v1281_v51 = vld [vmem:[#allocation7 + $0x2b8] sm:$0xff] }
 0x4db   :  { %2151 = vmatprep.subr.mxu1 %v1639_v53  ;;  %2081 = vmatpush2.msra.mxu0 %v1382_v54  ;;  %v1537_v52 = vld [vmem:[#allocation7 + $0xab8] sm:$0xff]  ;;  %v1280_v53 = vld [vmem:[#allocation7 + $0x2b0] sm:$0xff] }
 0x4dc   :  { %2152 = vmatpush2.msra.mxu1 %v1638_v55  ;;  %2082 = vmatprep.subr.mxu0 %v1375_v56  ;;  %v1536_v54 = vld [vmem:[#allocation7 + $0xab0] sm:$0xff]  ;;  %v1273_v55 = vld [vmem:[#allocation7 + $0x278] sm:$0xff] }
 0x4dd   :  { %2153 = vmatprep.subr.mxu1 %v1631_v57  ;;  %2083 = vmatpush2.msra.mxu0 %v1374_v58  ;;  %v1529_v56 = vld [vmem:[#allocation7 + $0xa78] sm:$0xff]  ;;  %v1272_v57 = vld [vmem:[#allocation7 + $0x270] sm:$0xff] }
 0x4de   :  { %2154 = vmatpush2.msra.mxu1 %v1630_v59  ;;  %2084 = vmatprep.subr.mxu0 %v1367_v60  ;;  %v1528_v58 = vld [vmem:[#allocation7 + $0xa70] sm:$0xff]  ;;  %v1265_v59 = vld [vmem:[#allocation7 + $0x238] sm:$0xff] }
 0x4df   :  { %2155 = vmatprep.subr.mxu1 %v1623_v61  ;;  %2085 = vmatpush2.msra.mxu0 %v1366_v62  ;;  %v1521_v60 = vld [vmem:[#allocation7 + $0xa38] sm:$0xff]  ;;  %v1264_v61 = vld [vmem:[#allocation7 + $0x230] sm:$0xff] }
 0x4e0   :  { %2156 = vmatpush2.msra.mxu1 %v1622_v63  ;;  %2086 = vmatprep.subr.mxu0 %v1359_v1  ;;  %v1520_v62 = vld [vmem:[#allocation7 + $0xa30] sm:$0xff]  ;;  %v1257_v63 = vld [vmem:[#allocation7 + $0x1f8] sm:$0xff] }
 0x4e1   :  { %2157 = vmatprep.subr.mxu1 %v1615_v2  ;;  %2087 = vmatpush2.msra.mxu0 %v1358_v3  ;;  %v1513_v1 = vld [vmem:[#allocation7 + $0x9f8] sm:$0xff]  ;;  %v1256_v2 = vld [vmem:[#allocation7 + $0x1f0] sm:$0xff] }
 0x4e2   :  { %2158 = vmatpush2.msra.mxu1 %v1614_v4  ;;  %2088 = vmatprep.subr.mxu0 %v1351_v5  ;;  %v1512_v3 = vld [vmem:[#allocation7 + $0x9f0] sm:$0xff]  ;;  %v1249_v4 = vld [vmem:[#allocation7 + $0x1b8] sm:$0xff] }
 0x4e3   :  { %2159 = vmatprep.subr.mxu1 %v1607_v6  ;;  %2089 = vmatpush2.msra.mxu0 %v1350_v7  ;;  %v1505_v5 = vld [vmem:[#allocation7 + $0x9b8] sm:$0xff]  ;;  %v1248_v6 = vld [vmem:[#allocation7 + $0x1b0] sm:$0xff] }
 0x4e4   :  { %2160 = vmatpush2.msra.mxu1 %v1606_v8  ;;  %2090 = vmatprep.subr.mxu0 %v1343_v13  ;;  %v1504_v7 = vld [vmem:[#allocation7 + $0x9b0] sm:$0xff]  ;;  %v1241_v8 = vld [vmem:[#allocation7 + $0x178] sm:$0xff] }
 0x4e5   :  { %2161 = vmatprep.subr.mxu1 %v1599_v15  ;;  %2091 = vmatpush2.msra.mxu0 %v1342_v16  ;;  %v1497_v13 = vld [vmem:[#allocation7 + $0x978] sm:$0xff]  ;;  %v1240_v15 = vld [vmem:[#allocation7 + $0x170] sm:$0xff] }
 0x4e6   :  { %2162 = vmatpush2.msra.mxu1 %v1598_v17  ;;  %2092 = vmatprep.subr.mxu0 %v1335_v18  ;;  %v1496_v16 = vld [vmem:[#allocation7 + $0x970] sm:$0xff]  ;;  %v1233_v17 = vld [vmem:[#allocation7 + $0x138] sm:$0xff] }
 0x4e7   :  { %2163 = vmatprep.subr.mxu1 %v1591_v19  ;;  %2093 = vmatpush2.msra.mxu0 %v1334_v20  ;;  %v1489_v18 = vld [vmem:[#allocation7 + $0x938] sm:$0xff]  ;;  %v1232_v19 = vld [vmem:[#allocation7 + $0x130] sm:$0xff] }
 0x4e8   :  { %2164 = vmatpush2.msra.mxu1 %v1590_v21  ;;  %2094 = vmatprep.subr.mxu0 %v1327_v22  ;;  %v1488_v20 = vld [vmem:[#allocation7 + $0x930] sm:$0xff]  ;;  %v1225_v21 = vld [vmem:[#allocation7 + $0xf8] sm:$0xff] }
 0x4e9   :  { %2165 = vmatprep.subr.mxu1 %v1583_v24  ;;  %2095 = vmatpush2.msra.mxu0 %v1326_v25  ;;  %v1481_v22 = vld [vmem:[#allocation7 + $0x8f8] sm:$0xff]  ;;  %v1224_v24 = vld [vmem:[#allocation7 + $0xf0] sm:$0xff] }
 0x4ea   :  { %2166 = vmatpush2.msra.mxu1 %v1582_v30  ;;  %2097 = vmatmul.mubr.f32.vlgmr.msra.gmra.mxu0 %v4588_v33  ;;  %v1480_v25 = vld [vmem:[#allocation7 + $0x8f0] sm:$0xff]  ;;  %v1217_v30 = vld [vmem:[#allocation7 + $0xb8] sm:$0xff] }
 0x4eb   :  { %2168 = vmatmul.mubr.f32.vlgmr.msra.gmra.mxu1 %v4592_v36  ;;  %2174 = vmatprep.subr.mxu0 %v1321_v31  ;;  %v1473_v31 = vld [vmem:[#allocation7 + $0x8b8] sm:$0xff] }
 0x4ec   :  { %2245 = vmatprep.subr.mxu1 %v1577_v28  ;;  %2175 = vmatpush1.msra.mxu0 %v1320_v23  ;;  %v1216_v28 = vld [vmem:[#allocation7 + $0xb0] sm:$0xff] }
 0x4ed   :  { %2238 = vmatprep.mubr.f32.mxu0 %v4586_v32  ;;  %2246 = vmatpush1.msra.mxu1 %v1576_v26  ;;  %v1289_v32 = vld [vmem:[#allocation7 + $0x2f8] sm:$0xff]  ;;  %v1472_v23 = vld [vmem:[#allocation7 + $0x8b0] sm:$0xff] }
 0x4ee   :  { %2309 = vmatprep.mubr.f32.mxu1 %v4590_v35  ;;  %2176 = vmatprep.subr.mxu0 %v1313_v27  ;;  %v1544_v35 = vld [vmem:[#allocation7 + $0xaf0] sm:$0xff]  ;;  %v1209_v26 = vld [vmem:[#allocation7 + $0x78] sm:$0xff] }
 0x4ef   :  { %2247 = vmatprep.subr.mxu1 %v1569_v40  ;;  %2177 = vmatpush1.msra.mxu0 %v1312_v42  ;;  %v1465_v27 = vld [vmem:[#allocation7 + $0x878] sm:$0xff]  ;;  %v1208_v40 = vld [vmem:[#allocation7 + $0x70] sm:$0xff] }
 0x4f0   :  { %2248 = vmatpush1.msra.mxu1 %v1568_v37  ;;  %2178 = vmatprep.subr.mxu0 %v1305_v41  ;;  %v1464_v42 = vld [vmem:[#allocation7 + $0x870] sm:$0xff]  ;;  %v1201_v37 = vld [vmem:[#allocation7 + $0x38] sm:$0xff] }
 0x4f1   :  { %2249 = vmatprep.subr.mxu1 %v1561_v38  ;;  %2179 = vmatpush1.msra.mxu0 %v1304_v43  ;;  %v1457_v41 = vld [vmem:[#allocation7 + $0x838] sm:$0xff]  ;;  %v1200_v38 = vld [vmem:[#allocation7 + $0x30] sm:$0xff] }
 0x4f2   :  { %2250 = vmatpush1.msra.mxu1 %v1560_v44  ;;  %2180 = vmatprep.subr.mxu0 %v1297_v45  ;;  %v1456_v43 = vld [vmem:[#allocation7 + $0x830] sm:$0xff]  ;;  %v1449_v44 = vld [vmem:[#allocation7 + $0x7f8] sm:$0xff] }
 0x4f3   :  { %2251 = vmatprep.subr.mxu1 %v1553_v46  ;;  %2181 = vmatpush1.msra.mxu0 %v1296_v47  ;;  %v1705_v45 = vld [vmem:[#allocation7 + $0xff8] sm:$0xff]  ;;  %v1448_v46 = vld [vmem:[#allocation7 + $0x7f0] sm:$0xff] }
 0x4f4   :  { %2252 = vmatpush1.msra.mxu1 %v1552_v48  ;;  %2182 = vmatprep.subr.mxu0 %v1289_v32  ;;  %v1704_v47 = vld [vmem:[#allocation7 + $0xff0] sm:$0xff]  ;;  %v1441_v48 = vld [vmem:[#allocation7 + $0x7b8] sm:$0xff] }
 0x4f5   :  { %2253 = vmatprep.subr.mxu1 %v1545_v49  ;;  %2183 = vmatpush1.msra.mxu0 %v1288_v50  ;;  %v1697_v32 = vld [vmem:[#allocation7 + $0xfb8] sm:$0xff]  ;;  %v1440_v49 = vld [vmem:[#allocation7 + $0x7b0] sm:$0xff] }
 0x4f6   :  { %2254 = vmatpush1.msra.mxu1 %v1544_v35  ;;  %2184 = vmatprep.subr.mxu0 %v1281_v51  ;;  %v1696_v50 = vld [vmem:[#allocation7 + $0xfb0] sm:$0xff]  ;;  %v1433_v35 = vld [vmem:[#allocation7 + $0x778] sm:$0xff] }
 0x4f7   :  { %2255 = vmatprep.subr.mxu1 %v1537_v52  ;;  %2185 = vmatpush1.msra.mxu0 %v1280_v53  ;;  %v1689_v51 = vld [vmem:[#allocation7 + $0xf78] sm:$0xff]  ;;  %v1432_v52 = vld [vmem:[#allocation7 + $0x770] sm:$0xff] }
 0x4f8   :  { %2256 = vmatpush1.msra.mxu1 %v1536_v54  ;;  %2186 = vmatprep.subr.mxu0 %v1273_v55  ;;  %v1688_v53 = vld [vmem:[#allocation7 + $0xf70] sm:$0xff]  ;;  %v1425_v54 = vld [vmem:[#allocation7 + $0x738] sm:$0xff] }
 0x4f9   :  { %2257 = vmatprep.subr.mxu1 %v1529_v56  ;;  %2187 = vmatpush1.msra.mxu0 %v1272_v57  ;;  %v1681_v55 = vld [vmem:[#allocation7 + $0xf38] sm:$0xff]  ;;  %v1424_v56 = vld [vmem:[#allocation7 + $0x730] sm:$0xff] }
 0x4fa   :  { %2258 = vmatpush1.msra.mxu1 %v1528_v58  ;;  %2188 = vmatprep.subr.mxu0 %v1265_v59  ;;  %v1680_v57 = vld [vmem:[#allocation7 + $0xf30] sm:$0xff]  ;;  %v1417_v58 = vld [vmem:[#allocation7 + $0x6f8] sm:$0xff] }
 0x4fb   :  { %2259 = vmatprep.subr.mxu1 %v1521_v60  ;;  %2189 = vmatpush1.msra.mxu0 %v1264_v61  ;;  %v1673_v59 = vld [vmem:[#allocation7 + $0xef8] sm:$0xff]  ;;  %v1416_v60 = vld [vmem:[#allocation7 + $0x6f0] sm:$0xff] }
 0x4fc   :  { %2260 = vmatpush1.msra.mxu1 %v1520_v62  ;;  %2190 = vmatprep.subr.mxu0 %v1257_v63  ;;  %v1672_v61 = vld [vmem:[#allocation7 + $0xef0] sm:$0xff]  ;;  %v1409_v62 = vld [vmem:[#allocation7 + $0x6b8] sm:$0xff] }
 0x4fd   :  { %2261 = vmatprep.subr.mxu1 %v1513_v1  ;;  %2191 = vmatpush1.msra.mxu0 %v1256_v2  ;;  %v1665_v63 = vld [vmem:[#allocation7 + $0xeb8] sm:$0xff]  ;;  %v1408_v1 = vld [vmem:[#allocation7 + $0x6b0] sm:$0xff] }
 0x4fe   :  { %2262 = vmatpush1.msra.mxu1 %v1512_v3  ;;  %2192 = vmatprep.subr.mxu0 %v1249_v4  ;;  %v1664_v2 = vld [vmem:[#allocation7 + $0xeb0] sm:$0xff]  ;;  %v1401_v3 = vld [vmem:[#allocation7 + $0x678] sm:$0xff] }
 0x4ff   :  { %2263 = vmatprep.subr.mxu1 %v1505_v5  ;;  %2193 = vmatpush1.msra.mxu0 %v1248_v6  ;;  %v1657_v4 = vld [vmem:[#allocation7 + $0xe78] sm:$0xff]  ;;  %v1400_v5 = vld [vmem:[#allocation7 + $0x670] sm:$0xff] }
 0x500   :  { %2264 = vmatpush1.msra.mxu1 %v1504_v7  ;;  %2194 = vmatprep.subr.mxu0 %v1241_v8  ;;  %v1656_v6 = vld [vmem:[#allocation7 + $0xe70] sm:$0xff]  ;;  %v1393_v7 = vld [vmem:[#allocation7 + $0x638] sm:$0xff] }
 0x501   :  { %2265 = vmatprep.subr.mxu1 %v1497_v13  ;;  %2195 = vmatpush1.msra.mxu0 %v1240_v15  ;;  %v1649_v8 = vld [vmem:[#allocation7 + $0xe38] sm:$0xff]  ;;  %v1392_v13 = vld [vmem:[#allocation7 + $0x630] sm:$0xff] }
 0x502   :  { %2266 = vmatpush1.msra.mxu1 %v1496_v16  ;;  %2196 = vmatprep.subr.mxu0 %v1233_v17  ;;  %v1648_v15 = vld [vmem:[#allocation7 + $0xe30] sm:$0xff]  ;;  %v1385_v16 = vld [vmem:[#allocation7 + $0x5f8] sm:$0xff] }
 0x503   :  { %2267 = vmatprep.subr.mxu1 %v1489_v18  ;;  %2197 = vmatpush1.msra.mxu0 %v1232_v19  ;;  %v1641_v17 = vld [vmem:[#allocation7 + $0xdf8] sm:$0xff]  ;;  %v1384_v18 = vld [vmem:[#allocation7 + $0x5f0] sm:$0xff] }
 0x504   :  { %2268 = vmatpush1.msra.mxu1 %v1488_v20  ;;  %2198 = vmatprep.subr.mxu0 %v1225_v21  ;;  %v1640_v19 = vld [vmem:[#allocation7 + $0xdf0] sm:$0xff]  ;;  %v1377_v20 = vld [vmem:[#allocation7 + $0x5b8] sm:$0xff] }
 0x505   :  { %2269 = vmatprep.subr.mxu1 %v1481_v22  ;;  %2199 = vmatpush1.msra.mxu0 %v1224_v24  ;;  %v1633_v21 = vld [vmem:[#allocation7 + $0xdb8] sm:$0xff]  ;;  %v1376_v22 = vld [vmem:[#allocation7 + $0x5b0] sm:$0xff] }
 0x506   :  { %2270 = vmatpush1.msra.mxu1 %v1480_v25  ;;  %2200 = vmatprep.subr.mxu0 %v1217_v30  ;;  %v1632_v24 = vld [vmem:[#allocation7 + $0xdb0] sm:$0xff]  ;;  %v1369_v25 = vld [vmem:[#allocation7 + $0x578] sm:$0xff] }
 0x507   :  { %2271 = vmatprep.subr.mxu1 %v1473_v31  ;;  %2201 = vmatpush1.msra.mxu0 %v1216_v28  ;;  %v1625_v30 = vld [vmem:[#allocation7 + $0xd78] sm:$0xff]  ;;  %v1368_v31 = vld [vmem:[#allocation7 + $0x570] sm:$0xff] }
 0x508   :  { %2272 = vmatpush1.msra.mxu1 %v1472_v23  ;;  %2202 = vmatprep.subr.mxu0 %v1209_v26  ;;  %v1624_v28 = vld [vmem:[#allocation7 + $0xd70] sm:$0xff]  ;;  %v1361_v23 = vld [vmem:[#allocation7 + $0x538] sm:$0xff] }
 0x509   :  { %2273 = vmatprep.subr.mxu1 %v1465_v27  ;;  %2203 = vmatpush1.msra.mxu0 %v1208_v40  ;;  %v1617_v26 = vld [vmem:[#allocation7 + $0xd38] sm:$0xff]  ;;  %v1360_v27 = vld [vmem:[#allocation7 + $0x530] sm:$0xff] }
 0x50a   :  { %2274 = vmatpush1.msra.mxu1 %v1464_v42  ;;  %2204 = vmatprep.subr.mxu0 %v1201_v37  ;;  %v1616_v40 = vld [vmem:[#allocation7 + $0xd30] sm:$0xff]  ;;  %v1353_v42 = vld [vmem:[#allocation7 + $0x4f8] sm:$0xff] }
 0x50b   :  { %2275 = vmatprep.subr.mxu1 %v1457_v41  ;;  %2205 = vmatpush1.msra.mxu0 %v1200_v38  ;;  %v1609_v37 = vld [vmem:[#allocation7 + $0xcf8] sm:$0xff]  ;;  %v1352_v41 = vld [vmem:[#allocation7 + $0x4f0] sm:$0xff]  ;;  %v4608_v38 = vld [vmem:[#allocation8] sm:$0xff] }
 0x50c   :  { %2276 = vmatpush1.msra.mxu1 %v1456_v43  ;;  %2206 = vmatprep.subr.mxu0 %v1449_v44  ;;  %v1608_v43 = vld [vmem:[#allocation7 + $0xcf0] sm:$0xff]  ;;  %v1345_v44 = vld [vmem:[#allocation7 + $0x4b8] sm:$0xff] }
 0x50d   :  { %2277 = vmatprep.subr.mxu1 %v1705_v45  ;;  %2207 = vmatpush2.msra.mxu0 %v1448_v46  ;;  %v1601_v45 = vld [vmem:[#allocation7 + $0xcb8] sm:$0xff]  ;;  %v1344_v46 = vld [vmem:[#allocation7 + $0x4b0] sm:$0xff] }
 0x50e   :  { %2278 = vmatpush2.msra.mxu1 %v1704_v47  ;;  %2208 = vmatprep.subr.mxu0 %v1441_v48  ;;  %v1600_v47 = vld [vmem:[#allocation7 + $0xcb0] sm:$0xff]  ;;  %v1337_v48 = vld [vmem:[#allocation7 + $0x478] sm:$0xff] }
 0x50f   :  { %2279 = vmatprep.subr.mxu1 %v1697_v32  ;;  %2209 = vmatpush2.msra.mxu0 %v1440_v49  ;;  %v1711_v32 = vrot.slane %v4608_v38, %v4485_v14  ;;  %v1593_v49 = vld [vmem:[#allocation7 + $0xc78] sm:$0xff] }
 0x510   :  { %2280 = vmatpush2.msra.mxu1 %v1696_v50  ;;  %2210 = vmatprep.subr.mxu0 %v1433_v35  ;;  %v1336_v50 = vld [vmem:[#allocation7 + $0x470] sm:$0xff]  ;;  %v1715_v35 = vrot.slane %v4608_v38, %v4479_v11 }
 0x511   :  { %2281 = vmatprep.subr.mxu1 %v1689_v51  ;;  %2211 = vmatpush2.msra.mxu0 %v1432_v52  ;;  %v1592_v51 = vld [vmem:[#allocation7 + $0xc70] sm:$0xff]  ;;  %v1329_v52 = vld [vmem:[#allocation7 + $0x438] sm:$0xff] }
 0x512   :  { %2282 = vmatpush2.msra.mxu1 %v1688_v53  ;;  %2212 = vmatprep.subr.mxu0 %v1425_v54  ;;  %v1585_v54 = vld [vmem:[#allocation7 + $0xc38] sm:$0xff] }
 0x513   :  { %2283 = vmatprep.subr.mxu1 %v1681_v55  ;;  %2213 = vmatpush2.msra.mxu0 %v1424_v56  ;;  %v1328_v55 = vld [vmem:[#allocation7 + $0x430] sm:$0xff] }
 0x514   :  { %2284 = vmatpush2.msra.mxu1 %v1680_v57  ;;  %2214 = vmatprep.subr.mxu0 %v1417_v58  ;;  %v1584_v57 = vld [vmem:[#allocation7 + $0xc30] sm:$0xff] }
 0x515   :  { %2285 = vmatprep.subr.mxu1 %v1673_v59  ;;  %2215 = vmatpush2.msra.mxu0 %v1416_v60 }
 0x516   :  { %2286 = vmatpush2.msra.mxu1 %v1672_v61  ;;  %2216 = vmatprep.subr.mxu0 %v1409_v62 }
 0x517   :  { %2287 = vmatprep.subr.mxu1 %v1665_v63  ;;  %2217 = vmatpush2.msra.mxu0 %v1408_v1 }
 0x518   :  { %2288 = vmatpush2.msra.mxu1 %v1664_v2  ;;  %2218 = vmatprep.subr.mxu0 %v1401_v3 }
 0x519   :  { %2289 = vmatprep.subr.mxu1 %v1657_v4  ;;  %2219 = vmatpush2.msra.mxu0 %v1400_v5 }
 0x51a   :  { %2290 = vmatpush2.msra.mxu1 %v1656_v6  ;;  %2220 = vmatprep.subr.mxu0 %v1393_v7 }
 0x51b   :  { %2291 = vmatprep.subr.mxu1 %v1649_v8  ;;  %2221 = vmatpush2.msra.mxu0 %v1392_v13  ;;  %v4641_v13 = vsub.s32 4, %v4473_v9 }
 0x51c   :  { %2292 = vmatpush2.msra.mxu1 %v1648_v15  ;;  %2222 = vmatprep.subr.mxu0 %v1385_v16  ;;  %v4644_v15 = vsub.s32 5, %v4473_v9 }
 0x51d   :  { %2293 = vmatprep.subr.mxu1 %v1641_v17  ;;  %2223 = vmatpush2.msra.mxu0 %v1384_v18  ;;  %v1727_v16 = vrot.slane %v4608_v38, %v4641_v13 }
 0x51e   :  { %2294 = vmatpush2.msra.mxu1 %v1640_v19  ;;  %2224 = vmatprep.subr.mxu0 %v1377_v20  ;;  %v1731_v17 = vrot.slane %v4608_v38, %v4644_v15 }
 0x51f   :  { %2295 = vmatprep.subr.mxu1 %v1633_v21  ;;  %2225 = vmatpush2.msra.mxu0 %v1376_v22 }
 0x520   :  { %2296 = vmatpush2.msra.mxu1 %v1632_v24  ;;  %2226 = vmatprep.subr.mxu0 %v1369_v25 }
 0x521   :  { %2297 = vmatprep.subr.mxu1 %v1625_v30  ;;  %2227 = vmatpush2.msra.mxu0 %v1368_v31  ;;  %v4660_v31 = vsub.s32 6, %v4473_v9 }
 0x522   :  { %2298 = vmatpush2.msra.mxu1 %v1624_v28  ;;  %2228 = vmatprep.subr.mxu0 %v1361_v23  ;;  %v4663_v28 = vsub.s32 7, %v4473_v9 }
 0x523   :  { %2299 = vmatprep.subr.mxu1 %v1617_v26  ;;  %2229 = vmatpush2.msra.mxu0 %v1360_v27  ;;  %v1735_v23 = vrot.slane %v4608_v38, %v4660_v31 }
 0x524   :  { %2300 = vmatpush2.msra.mxu1 %v1616_v40  ;;  %2230 = vmatprep.subr.mxu0 %v1353_v42  ;;  %v1739_v26 = vrot.slane %v4608_v38, %v4663_v28 }
 0x525   :  { %2301 = vmatprep.subr.mxu1 %v1609_v37  ;;  %2231 = vmatpush2.msra.mxu0 %v1352_v41 }
 0x526   :  { %2302 = vmatpush2.msra.mxu1 %v1608_v43  ;;  %2232 = vmatprep.subr.mxu0 %v1345_v44 }
 0x527   :  { %2303 = vmatprep.subr.mxu1 %v1601_v45  ;;  %2233 = vmatpush2.msra.mxu0 %v1344_v46  ;;  %v1814_v53 = vpop.f32.mrf.mxu0 }
 0x528   :  { %2304 = vmatpush2.msra.mxu1 %v1600_v47  ;;  %2234 = vmatprep.subr.mxu0 %v1337_v48  ;;  %v1885_v56 = vpop.f32.mrf.mxu1  ;;  %v1815_v58 = vadd.f32 %v1814_v53, %v1711_v32 }
 0x529   :  { %2305 = vmatprep.subr.mxu1 %v1593_v49  ;;  %2235 = vmatpush2.msra.mxu0 %v1336_v50  ;;  %v1816_v59 = vpop.f32.mrf.mxu0 }
 0x52a   :  { %2306 = vmatpush2.msra.mxu1 %v1592_v51  ;;  %2236 = vmatprep.subr.mxu0 %v1329_v52  ;;  %v1817_v60 = vadd.f32 %v1816_v59, %v1715_v35  ;;  %v1887_v61 = vpop.f32.mrf.mxu1  ;;  %v4618_v63 = vadd.f32 %v1885_v56, %v1815_v58 }
 0x52b   :  { %2307 = vmatprep.subr.mxu1 %v1585_v54  ;;  %2237 = vmatpush2.msra.mxu0 %v1328_v55 }
 0x52c   :  { %2308 = vmatpush2.msra.mxu1 %v1584_v57  ;;  %2239 = vmatmul.mubr.f32.vlgmr.msra.gmra.mxu0 %v4588_v33  ;;  %v4615_v62 = vadd.f32 %v1887_v61, %v1817_v60  ;;  %v1719_v33 = vrot.slane %v4608_v38, %v4476_v10 }
 0x52d   :  { %2310 = vmatmul.mubr.f32.vlgmr.msra.gmra.mxu1 %v4592_v36  ;;  %2382 = vmatprep.mubr.f32.mxu0 %v4169_v0  ;;  %v1723_v36 = vrot.slane %v4608_v38, %v4482_v12 }
 0x52e   :  { %2348 = vmatprep.subr.mxu0 %v4615_v62  ;;  %2453 = vmatprep.mubr.f32.mxu1 %v4169_v0 }
 0x52f   :  { %2349 = vmatpush1.msra.mxu0 %v4618_v63 }
 0x530   :  { %3954 = vmatmul.mubr.msk.f32.vlgmr.msra.gmra.mxu0 %vm382_vm3, %v4505_v29 }
 0x531   :  { %2524 = vmatprep.mubr.f32.mxu0 %v4169_v0 }
 0x568   :  { %v1956_v1 = vpop.f32.mrf.mxu0 }
 0x569   :  { %v2027_v2 = vpop.f32.mrf.mxu1  ;;  %v1957_v3 = vadd.f32 %v1956_v1, %v1719_v33 }
 0x56a   :  { %v1958_v4 = vpop.f32.mrf.mxu0 }
 0x56b   :  { %v1959_v5 = vadd.f32 %v1958_v4, %v1723_v36  ;;  %v2029_v6 = vpop.f32.mrf.mxu1  ;;  %v4633_v8 = vadd.f32 %v2027_v2, %v1957_v3 }
 0x56d   :  { %v4631_v7 = vadd.f32 %v2029_v6, %v1959_v5 }
 0x56f   :  { %2419 = vmatprep.subr.mxu1 %v4631_v7 }
 0x570   :  { %2420 = vmatpush1.msra.mxu1 %v4633_v8 }
 0x571   :  { %3955 = vmatmul.mubr.msk.f32.vlgmr.msra.gmra.mxu1 %vm382_vm3, %v4505_v29 }
 0x572   :  { %2595 = vmatprep.mubr.f32.mxu1 %v4169_v0 }
 0x5aa   :  { %v2098_v18 = vpop.f32.mrf.mxu0 }
 0x5ab   :  { %v2169_v19 = vpop.f32.mrf.mxu1  ;;  %v2099_v20 = vadd.f32 %v2098_v18, %v1727_v16 }
 0x5ac   :  { %v2100_v21 = vpop.f32.mrf.mxu0 }
 0x5ad   :  { %v2101_v22 = vadd.f32 %v2100_v21, %v1731_v17  ;;  %v2171_v24 = vpop.f32.mrf.mxu1  ;;  %v4652_v30 = vadd.f32 %v2169_v19, %v2099_v20 }
 0x5af   :  { %v4650_v25 = vadd.f32 %v2171_v24, %v2101_v22 }
 0x5b1   :  { %2490 = vmatprep.subr.mxu0 %v4650_v25 }
 0x5b2   :  { %2491 = vmatpush1.msra.mxu0 %v4652_v30 }
 0x5b3   :  { %3956 = vmatmul.mubr.msk.f32.vlgmr.msra.gmra.mxu0 %vm382_vm3, %v4505_v29 }
 0x5b4   :  { %2674 = vmatprep.mubr.f32.mxu0 %v4169_v0 }
 0x5ec   :  { %v2240_v27 = vpop.f32.mrf.mxu0 }
 0x5ed   :  { %v2311_v40 = vpop.f32.mrf.mxu1  ;;  %v2241_v42 = vadd.f32 %v2240_v27, %v1735_v23 }
 0x5ee   :  { %v2242_v37 = vpop.f32.mrf.mxu0 }
 0x5ef   :  { %v2243_v41 = vadd.f32 %v2242_v37, %v1739_v26  ;;  %v2313_v43 = vpop.f32.mrf.mxu1  ;;  %v4671_v46 = vadd.f32 %v2311_v40, %v2241_v42 }
 0x5f0   :  { %v2384_v44 = vpop.f32.mrf.mxu0 }
 0x5f1   :  { %v4669_v45 = vadd.f32 %v2313_v43, %v2243_v41  ;;  %v4679_v38 = vmul.f32 %v2384_v44, %v4523_v34 }
 0x5f2   :  { %v2386_v47 = vpop.f32.mrf.mxu0 }
 0x5f3   :  { %2561 = vmatprep.subr.mxu1 %v4669_v45  ;;  %v4675_v9 = vmul.f32 %v2386_v47, %v4523_v34 }
 0x5f4   :  { %2562 = vmatpush1.msra.mxu1 %v4671_v46 }
 0x5f5   :  { %3957 = vmatmul.mubr.msk.f32.vlgmr.msra.gmra.mxu1 %vm382_vm3, %v4505_v29  ;;  %2640 = vmatprep.subr.mxu0 %v4675_v9 }
 0x5f6   :  { %2641 = vmatpush1.msra.mxu0 %v4679_v38  ;;  %2745 = vmatprep.mubr.f32.mxu1 %v4169_v0 }
 0x5f7   :  { %3958 = vmatmul.mubr.msk.f32.vlgmr.msra.gmra.mxu0 %vm382_vm3, %v4532_v39 }
 0x5f8   :  { %2816 = vmatprep.mubr.f32.mxu0 %v4169_v0 }
 0x631   :  { %v2455_v48 = vpop.f32.mrf.mxu1 }
 0x632   :  { %v4693_v50 = vmul.f32 %v2455_v48, %v4523_v34  ;;  %v4744_v48 = vld [vmem:[#allocation10] sm:$0xff] }
 0x633   :  { %v2457_v32 = vpop.f32.mrf.mxu1 }
 0x634   :  { %v4690_v49 = vmul.f32 %v2457_v32, %v4523_v34  ;;  %v3226_v32 = vrot.slane %v4744_v48, %v4479_v11 }
 0x636   :  { %2711 = vmatprep.subr.mxu1 %v4690_v49 }
 0x637   :  { %2712 = vmatpush1.msra.mxu1 %v4693_v50 }
 0x638   :  { %3959 = vmatmul.mubr.msk.f32.vlgmr.msra.gmra.mxu1 %vm382_vm3, %v4532_v39 }
 0x639   :  { %2887 = vmatprep.mubr.f32.mxu1 %v4169_v0 }
 0x673   :  { %v2526_v35 = vpop.f32.mrf.mxu0 }
 0x674   :  { %v4704_v53 = vmul.f32 %v2526_v35, %v4523_v34  ;;  %v3222_v35 = vrot.slane %v4744_v48, %v4485_v14 }
 0x675   :  { %v2528_v51 = vpop.f32.mrf.mxu0 }
 0x676   :  { %v4701_v52 = vmul.f32 %v2528_v51, %v4523_v34 }
 0x678   :  { %2782 = vmatprep.subr.mxu0 %v4701_v52 }
 0x679   :  { %2783 = vmatpush1.msra.mxu0 %v4704_v53 }
 0x67a   :  { %3960 = vmatmul.mubr.msk.f32.vlgmr.msra.gmra.mxu0 %vm382_vm3, %v4532_v39 }
 0x67b   :  { %2974 = vmatprep.mubr.f32.mxu0 %v4169_v0 }
 0x6b5   :  { %v2597_v54 = vpop.f32.mrf.mxu1 }
 0x6b6   :  { %v4715_v58 = vmul.f32 %v2597_v54, %v4523_v34 }
 0x6b7   :  { %v2599_v55 = vpop.f32.mrf.mxu1  ;;  %v2676_v56 = vpop.f32.mrf.mxu0 }
 0x6b8   :  { %v4712_v57 = vmul.f32 %v2599_v55, %v4523_v34  ;;  %v2894_v59 = vsub.f32 %v4618_v63, %v2676_v56 }
 0x6b9   :  { %v2678_v60 = vpop.f32.mrf.mxu0 }
 0x6ba   :  { %2853 = vmatprep.subr.mxu1 %v4712_v57  ;;  %v2895_v61 = vsub.f32 %v4615_v62, %v2678_v60  ;;  %v2902_v36 = vmul.f32 %v2894_v59, %v2894_v59 }
 0x6bb   :  { %2854 = vmatpush1.msra.mxu1 %v4715_v58 }
 0x6bc   :  { %3961 = vmatmul.mubr.msk.f32.vlgmr.msra.gmra.mxu1 %vm382_vm3, %v4532_v39  ;;  %v2903_v33 = vmul.f32 %v2895_v61, %v2895_v61 }
 0x6bd   :  { %3045 = vmatprep.mubr.f32.mxu1 %v4169_v0 }
 0x6be   :  { %2940 = vmatprep.subr.mxu0 %v2903_v33 }
 0x6bf   :  { %2941 = vmatpush1.msra.mxu0 %v2902_v36 }
 0x6c0   :  { %3962 = vmatmul.mubr.msk.f32.vlgmr.msra.gmra.mxu0 %vm382_vm3, %v4505_v29 }
 0x6c1   :  { %3116 = vmatprep.mubr.f32.mxu0 %v4169_v0 }
 0x6f8   :  { %v2747_v1 = vpop.f32.mrf.mxu1 }
 0x6f9   :  { %v2896_v2 = vsub.f32 %v4633_v8, %v2747_v1  ;;  %v3234_v1 = vrot.slane %v4744_v48, %v4482_v12 }
 0x6fa   :  { %v2749_v3 = vpop.f32.mrf.mxu1 }
 0x6fb   :  { %v2897_v4 = vsub.f32 %v4631_v7, %v2749_v3  ;;  %v2904_v6 = vmul.f32 %v2896_v2, %v2896_v2  ;;  %v3230_v2 = vrot.slane %v4744_v48, %v4476_v10 }
 0x6fd   :  { %v2905_v5 = vmul.f32 %v2897_v4, %v2897_v4 }
 0x6ff   :  { %3011 = vmatprep.subr.mxu1 %v2905_v5 }
 0x700   :  { %3012 = vmatpush1.msra.mxu1 %v2904_v6 }
 0x701   :  { %3963 = vmatmul.mubr.msk.f32.vlgmr.msra.gmra.mxu1 %vm382_vm3, %v4505_v29 }
 0x702   :  { %3187 = vmatprep.mubr.f32.mxu1 %v4169_v0 }
 0x73a   :  { %v2818_v16 = vpop.f32.mrf.mxu0 }
 0x73b   :  { %v2898_v17 = vsub.f32 %v4652_v30, %v2818_v16 }
 0x73c   :  { %v2820_v18 = vpop.f32.mrf.mxu0 }
 0x73d   :  { %v2899_v19 = vsub.f32 %v4650_v25, %v2820_v18  ;;  %v2906_v21 = vmul.f32 %v2898_v17, %v2898_v17 }
 0x73f   :  { %v2907_v20 = vmul.f32 %v2899_v19, %v2899_v19 }
 0x741   :  { %3082 = vmatprep.subr.mxu0 %v2907_v20 }
 0x742   :  { %3083 = vmatpush1.msra.mxu0 %v2906_v21 }
 0x743   :  { %3964 = vmatmul.mubr.msk.f32.vlgmr.msra.gmra.mxu0 %vm382_vm3, %v4505_v29 }
 0x744   :  { %3388 = vmatprep.mubr.f32.mxu0 %v4169_v0 }
 0x77c   :  { %v2889_v22 = vpop.f32.mrf.mxu1 }
 0x77d   :  { %v2900_v24 = vsub.f32 %v4671_v46, %v2889_v22  ;;  %v3238_v22 = vrot.slane %v4744_v48, %v4641_v13 }
 0x77e   :  { %v2891_v23 = vpop.f32.mrf.mxu1 }
 0x77f   :  { %v2901_v26 = vsub.f32 %v4669_v45, %v2891_v23  ;;  %v2908_v37 = vmul.f32 %v2900_v24, %v2900_v24  ;;  %v3242_v24 = vrot.slane %v4744_v48, %v4644_v15  ;;  %v2317_v23 = vld [vmem:[#allocation11] sm:$0xff] }
 0x780   :  { %v2976_v27 = vpop.f32.mrf.mxu0 }
 0x781   :  { %v2909_v40 = vmul.f32 %v2901_v26, %v2901_v26  ;;  %v3194_v42 = vmul.f32 %v2976_v27, %v4523_v34 }
 0x782   :  { %v2978_v41 = vpop.f32.mrf.mxu0 }
 0x783   :  { %3153 = vmatprep.subr.mxu1 %v2909_v40  ;;  %v3202_v43 = vadd.f32 1e-05, %v3194_v42  ;;  %v3195_v44 = vmul.f32 %v2978_v41, %v4523_v34  ;;  %v3283_v40 = vrot.slane %v2317_v23, %v4479_v11 }
 0x784   :  { %3154 = vmatpush1.msra.mxu1 %v2908_v37 }
 0x785   :  { %3965 = vmatmul.mubr.msk.f32.vlgmr.msra.gmra.mxu1 %vm382_vm3, %v4505_v29  ;;  %v3203_v47 = vadd.f32 1e-05, %v3195_v44  ;;  %3995 = vrsqrt.f32 %v3202_v43  ;;  %v3279_v43 = vrot.slane %v2317_v23, %v4485_v14 }
 0x786   :  { %3459 = vmatprep.mubr.f32.mxu1 %v4169_v0 }
 0x787   :  { %3997 = vrsqrt.f32 %v3203_v47  ;;  %v3299_v47 = vrot.slane %v2317_v23, %v4644_v15 }
 0x792   :  { %v3996_v51 = vpop.eup %3995 }
 0x793   :  { %v3259_v56 = vmul.f32 %v3996_v51, %v3222_v35 }
 0x794   :  { %v3998_v54 = vpop.eup %3997 }
 0x795   :  { %v3260_v55 = vmul.f32 %v3998_v54, %v3226_v32  ;;  %v3267_v41 = vmul.f32 %v3259_v56, %v4679_v38 }
 0x797   :  { %3354 = vmatprep.subr.mxu0 %v3260_v55  ;;  %v3268_v27 = vmul.f32 %v3260_v55, %v4675_v9  ;;  %v3316_v51 = vsub.f32 %v3279_v43, %v3267_v41  ;;  %v3295_v9 = vrot.slane %v2317_v23, %v4641_v13 }
 0x798   :  { %3355 = vmatpush1.msra.mxu0 %v3259_v56  ;;  %v3246_v56 = vrot.slane %v4744_v48, %v4660_v31 }
 0x799   :  { %3966 = vmatmul.mubr.msk.f32.vlgmr.msra.gmra.mxu0 %vm382_vm3, %v4532_v39  ;;  %v3317_v32 = vsub.f32 %v3283_v40, %v3268_v27 }
 0x79a   :  { %3530 = vmatprep.mubr.f32.mxu0 %v4169_v0 }
 0x7c1   :  { %v3047_v29 = vpop.f32.mrf.mxu1 }
 0x7c2   :  { %v3196_v59 = vmul.f32 %v3047_v29, %v4523_v34  ;;  %v3250_v29 = vrot.slane %v4744_v48, %v4663_v28 }
 0x7c3   :  { %v3049_v60 = vpop.f32.mrf.mxu1 }
 0x7c4   :  { %v3204_v61 = vadd.f32 1e-05, %v3196_v59  ;;  %v3197_v33 = vmul.f32 %v3049_v60, %v4523_v34 }
 0x7c6   :  { %v3205_v36 = vadd.f32 1e-05, %v3197_v33  ;;  %3999 = vrsqrt.f32 %v3204_v61  ;;  %v3291_v61 = vrot.slane %v2317_v23, %v4482_v12 }
 0x7c8   :  { %4001 = vrsqrt.f32 %v3205_v36 }
 0x7d3   :  { %v4000_v3 = vpop.eup %3999 }
 0x7d4   :  { %v3261_v6 = vmul.f32 %v4000_v3, %v3230_v2  ;;  %v3307_v3 = vrot.slane %v2317_v23, %v4663_v28 }
 0x7d5   :  { %v4002_v4 = vpop.eup %4001 }
 0x7d6   :  { %v3262_v5 = vmul.f32 %v4002_v4, %v3234_v1  ;;  %v3269_v1 = vmul.f32 %v3261_v6, %v4693_v50 }
 0x7d8   :  { %3425 = vmatprep.subr.mxu1 %v3262_v5  ;;  %v3270_v60 = vmul.f32 %v3262_v5, %v4690_v49  ;;  %v3303_v49 = vrot.slane %v2317_v23, %v4660_v31 }
 0x7d9   :  { %3426 = vmatpush1.msra.mxu1 %v3261_v6 }
 0x7da   :  { %3967 = vmatmul.mubr.msk.f32.vlgmr.msra.gmra.mxu1 %vm382_vm3, %v4532_v39  ;;  %v3319_v4 = vsub.f32 %v3291_v61, %v3270_v60 }
 0x7db   :  { %3601 = vmatprep.mubr.f32.mxu1 %v4169_v0 }
 0x803   :  { %v3118_v16 = vpop.f32.mrf.mxu0 }
 0x804   :  { %v3198_v17 = vmul.f32 %v3118_v16, %v4523_v34 }
 0x805   :  { %v3120_v18 = vpop.f32.mrf.mxu0 }
 0x806   :  { %v3206_v19 = vadd.f32 1e-05, %v3198_v17  ;;  %v3199_v20 = vmul.f32 %v3120_v18, %v4523_v34 }
 0x808   :  { %4003 = vrsqrt.f32 %v3206_v19  ;;  %v3207_v21 = vadd.f32 1e-05, %v3199_v20 }
 0x80a   :  { %4005 = vrsqrt.f32 %v3207_v21 }
 0x815   :  { %v4004_v26 = vpop.eup %4003 }
 0x816   :  { %v3263_v37 = vmul.f32 %v4004_v26, %v3238_v22 }
 0x817   :  { %v4006_v42 = vpop.eup %4005 }
 0x818   :  { %v3264_v44 = vmul.f32 %v4006_v42, %v3242_v24  ;;  %v3271_v54 = vmul.f32 %v3263_v37, %v4704_v53 }
 0x81a   :  { %3496 = vmatprep.subr.mxu0 %v3264_v44  ;;  %v3272_v35 = vmul.f32 %v3264_v44, %v4701_v52  ;;  %v3320_v14 = vsub.f32 %v3295_v9, %v3271_v54 }
 0x81b   :  { %3497 = vmatpush1.msra.mxu0 %v3263_v37 }
 0x81c   :  { %3968 = vmatmul.mubr.msk.f32.vlgmr.msra.gmra.mxu0 %vm382_vm3, %v4532_v39  ;;  %3638 = vmatprep.subr.mxu0 %v3317_v32  ;;  %v3321_v11 = vsub.f32 %v3299_v47, %v3272_v35 }
 0x81d   :  { %3639 = vmatpush1.msra.mxu0 %v3316_v51  ;;  %3672 = vmatprep.mubr.f32.mxu0 %v4169_v0 }
 0x81e   :  { %3780 = vmatprep.subr.mxu0 %v3321_v11 }
 0x820   :  { %3970 = vmatmul.mubr.msk.f32.vlgmr.msra.gmra.mxu0 %vm382_vm3, %v4532_v39 }
 0x821   :  { %3781 = vmatpush1.msra.mxu0 %v3320_v14  ;;  %3814 = vmatprep.mubr.f32.mxu0 %v4169_v0 }
 0x824   :  { %3972 = vmatmul.mubr.msk.f32.vlgmr.msra.gmra.mxu0 %vm382_vm3, %v4532_v39 }
 0x845   :  { %v3189_v13 = vpop.f32.mrf.mxu1 }
 0x846   :  { %v3200_v15 = vmul.f32 %v3189_v13, %v4523_v34 }
 0x847   :  { %v3191_v38 = vpop.f32.mrf.mxu1 }
 0x848   :  { %v3208_v52 = vadd.f32 1e-05, %v3200_v15  ;;  %v3201_v53 = vmul.f32 %v3191_v38, %v4523_v34  ;;  %v3287_v34 = vrot.slane %v2317_v23, %v4476_v10 }
 0x84a   :  { %4007 = vrsqrt.f32 %v3208_v52  ;;  %v3209_v55 = vadd.f32 1e-05, %v3201_v53  ;;  %v3318_v48 = vsub.f32 %v3287_v34, %v3269_v1 }
 0x84c   :  { %4009 = vrsqrt.f32 %v3209_v55 }
 0x857   :  { %v4008_v59 = vpop.eup %4007 }
 0x858   :  { %v3265_v36 = vmul.f32 %v4008_v59, %v3246_v56 }
 0x859   :  { %v4010_v33 = vpop.eup %4009  ;;  %v3390_v31 = vpop.f32.mrf.mxu0 }
 0x85a   :  { %v3266_v2 = vmul.f32 %v4010_v33, %v3250_v29  ;;  %v3273_v17 = vmul.f32 %v3265_v36, %v4715_v58  ;;  %v3892_v58 = vmul.f32 %v3390_v31, %v4618_v63 }
 0x85b   :  { %v3392_v28 = vpop.f32.mrf.mxu0 }
 0x85c   :  { %3567 = vmatprep.subr.mxu1 %v3266_v2  ;;  %v3274_v16 = vmul.f32 %v3266_v2, %v4712_v57  ;;  %v3322_v10 = vsub.f32 %v3303_v49, %v3273_v17  ;;  %v3893_v6 = vmul.f32 %v3392_v28, %v4615_v62 }
 0x85d   :  { %3568 = vmatpush1.msra.mxu1 %v3265_v36 }
 0x85e   :  { %3969 = vmatmul.mubr.msk.f32.vlgmr.msra.gmra.mxu1 %vm382_vm3, %v4532_v39  ;;  %3709 = vmatprep.subr.mxu1 %v3319_v4  ;;  %v3323_v12 = vsub.f32 %v3307_v3, %v3274_v16 }
 0x85f   :  { %3710 = vmatpush1.msra.mxu1 %v3318_v48  ;;  %3743 = vmatprep.mubr.f32.mxu1 %v4169_v0 }
 0x860   :  { %3851 = vmatprep.subr.mxu1 %v3323_v12 }
 0x862   :  { %3971 = vmatmul.mubr.msk.f32.vlgmr.msra.gmra.mxu1 %vm382_vm3, %v4532_v39 }
 0x863   :  { %3852 = vmatpush1.msra.mxu1 %v3322_v10  ;;  %3885 = vmatprep.mubr.f32.mxu1 %v4169_v0 }
 0x866   :  { %3973 = vmatmul.mubr.msk.f32.vlgmr.msra.gmra.mxu1 %vm382_vm3, %v4532_v39 }
 0x89a   :  { %v3461_v62 = vpop.f32.mrf.mxu1 }
 0x89c   :  { %v3463_v42 = vpop.f32.mrf.mxu1 }
 0x89d   :  { %v3895_v44 = vmul.f32 %v3463_v42, %v4631_v7 }
 0x8dc   :  { %v3532_v50 = vpop.f32.mrf.mxu0 }
 0x8dd   :  { %v3896_v20 = vmul.f32 %v3532_v50, %v4652_v30  ;;  %v3894_v30 = vmul.f32 %v3461_v62, %v4633_v8 }
 0x8de   :  { %v3534_v57 = vpop.f32.mrf.mxu0 }
 0x8df   :  { %v3897_v0 = vmul.f32 %v3534_v57, %v4650_v25 }
 0x8e0   :  { %v3674_v5 = vpop.f32.mrf.mxu0 }
 0x8e1   :  { %v3900_v18 = vadd.f32 %v3892_v58, %v3674_v5 }
 0x8e2   :  { %v3676_v19 = vpop.f32.mrf.mxu0 }
 0x8e3   :  { %v3908_v21 = vmax.f32 %v3900_v18, 0.0  ;;  %v3901_v22 = vadd.f32 %v3893_v6, %v3676_v19 }
 0x8e4   :  { %v3816_v24 = vpop.f32.mrf.mxu0 }
 0x8e5   :  { %3916 = vst [vmem:[#allocation13] sm:$0xff] %v3908_v21  ;;  %v3909_v39 = vmax.f32 %v3901_v22, 0.0  ;;  %v3904_v23 = vadd.f32 %v3896_v20, %v3816_v24 }
 0x8e6   :  { %v3818_v26 = vpop.f32.mrf.mxu0 }
 0x8e7   :  { %3917 = vst [vmem:[#allocation13 + $0x8] sm:$0xff] %v3909_v39  ;;  %v3912_v27 = vmax.f32 %v3904_v23, 0.0  ;;  %v3905_v40 = vadd.f32 %v3897_v0, %v3818_v26 }
 0x8e9   :  { %3920 = vst [vmem:[#allocation13 + $0x20] sm:$0xff] %v3912_v27  ;;  %v3913_v63 = vmax.f32 %v3905_v40, 0.0 }
 0x8eb   :  { %3921 = vst [vmem:[#allocation13 + $0x28] sm:$0xff] %v3913_v63 }
 0x91e   :  { %v3603_v37 = vpop.f32.mrf.mxu1 }
 0x91f   :  { %v3898_v32 = vmul.f32 %v3603_v37, %v4671_v46 }
 0x920   :  { %v3605_v41 = vpop.f32.mrf.mxu1 }
 0x921   :  { %v3899_v9 = vmul.f32 %v3605_v41, %v4669_v45 }
 0x922   :  { %v3745_v43 = vpop.f32.mrf.mxu1 }
 0x923   :  { %v3902_v25 = vadd.f32 %v3894_v30, %v3745_v43 }
 0x924   :  { %v3747_v47 = vpop.f32.mrf.mxu1 }
 0x925   :  { %v3910_v35 = vmax.f32 %v3902_v25, 0.0  ;;  %v3903_v51 = vadd.f32 %v3895_v44, %v3747_v47 }
 0x926   :  { %v3887_v54 = vpop.f32.mrf.mxu1 }
 0x927   :  { %3918 = vst [vmem:[#allocation13 + $0x10] sm:$0xff] %v3910_v35  ;;  %v3911_v11 = vmax.f32 %v3903_v51, 0.0  ;;  %v3906_v14 = vadd.f32 %v3898_v32, %v3887_v54 }
 0x928   :  { %v3889_v13 = vpop.f32.mrf.mxu1 }
 0x929   :  { %3919 = vst [vmem:[#allocation13 + $0x18] sm:$0xff] %v3911_v11  ;;  %v3914_v8 = vmax.f32 %v3906_v14, 0.0  ;;  %v3907_v15 = vadd.f32 %v3899_v9, %v3889_v13 }
 0x92b   :  { %3922 = vst [vmem:[#allocation13 + $0x30] sm:$0xff] %v3914_v8  ;;  %v3915_v7 = vmax.f32 %v3907_v15, 0.0 }
 0x92d   :  { %3923 = vst [vmem:[#allocation13 + $0x38] sm:$0xff] %v3915_v7 }
 0x92e   :  { %4142 = shalt.err (!%p4139_p6)
}
 0x92f   :  { %3933 = dma.vmem_to_hbm [thread:$0]  %s3931_s12, 1024, %s4831_s14, [#allocation4]  }
 0x930   :  { %4159 = dma.done.wait [#allocation4], 1024  }
 0x931   :  { %4160 = vsyncadd [#allocation4], 4294966272 }
 0x932   :  { %3937 = vsyncpa [#allocation3], 1 }
 0x933   :  { %3938 = vsyncpa [#allocation6], 1 }
 0x934   :  { %3939 = vsyncpa [#allocation9], 1 }
 0x935   :  { %3940 = vsyncpa [#allocation12], 1 }
 0x936   :  { %3941 = vsyncpa [#allocation4], 1 }

</bundles_post_ra>
